<compile_context>
chip_gen: v7x
topology: tpu7x:2x2x1
jax: 0.10.0
libtpu: 0.0.40
codegen_flags: <defaults>
</compile_context>

<pallas_src>
import math

import jax
import jax.numpy as jnp
from jax import lax
from jax.experimental import pallas as pl
from jax.experimental.pallas import tpu as pltpu

# ----- module hyper-parameters (small, consistent with ConvAdapter3's forward) -----
B = 2              # batch
HID = 32           # fc_in_channels (transformer hidden)
D = 16             # in_channels (adapter dim)
S = 8              # spatial side
SS = S * S         # 64 spatial tokens
P = SS + 1         # 65 tokens (cls + spatial)
PPAD = 72          # padded rows per batch inside the kernel (multiple of 8)
CH1 = 8            # ch1x1
CH3RED = 8         # ch3x3red
CH3 = 8            # ch3x3   (ch1x1 + ch3x3 == in_channels, as in the 192/48/192 config)
KS = 3             # 3x3 conv
PAD = 1            # padding = 1
EPS = 1e-3
PADROWS = 16       # zero halo above/below the conv input for the row-shift trick
# skip_connect defaults to False -> no trailing residual with the raw input.

assert CH1 + CH3 == D

# ----- packed weight-slab row offsets (all matrices start on 8-aligned rows) -----
R_FC1W = 0                        # [HID, D]
R_FC1B = R_FC1W + HID             # 32
R_W1X1 = 40                       # [D, D] merged 1x1 (branch1 | branch2-reduce)
R_B1X1 = R_W1X1 + D               # 56
R_TAPS = 64                       # 9 taps x [D, D]
R_B3 = R_TAPS + KS * KS * D       # 208
N16 = R_B3 + 8                    # 216 rows, 16 lanes
R_FC2W = 0                        # [D, HID]
R_FC2B = R_FC2W + D               # 16
N32 = 24                          # rows, 32 lanes

_SQRT_2_OVER_PI = math.sqrt(2.0 / math.pi)


def _gelu(x):
    # tanh-approximate GELU (same formula used in kernel and reference).
    # TODO(synk): PyTorch F.gelu defaults to the exact erf form; difference < 1e-3.
    return 0.5 * x * (1.0 + jnp.tanh(_SQRT_2_OVER_PI * (x + 0.044715 * (x * x * x))))


# ---------------------------- fused Pallas kernel ----------------------------

def _adapter_kernel(x_ref, w16_ref, w32_ref, o_ref):
    f32 = jnp.float32

    # ---- weights: read once from the two packed slabs (static, aligned offsets) ----
    fc1w = w16_ref[R_FC1W:R_FC1W + HID, :]        # [HID, D]
    fc1b = w16_ref[R_FC1B:R_FC1B + 1, :]          # [1, D]
    w1x1 = w16_ref[R_W1X1:R_W1X1 + D, :]          # [D, D]
    b1x1 = w16_ref[R_B1X1:R_B1X1 + 1, :]          # [1, D]
    b3 = w16_ref[R_B3:R_B3 + 1, :]                # [1, D]   (lanes CH1: hold the bias)
    fc2w = w32_ref[R_FC2W:R_FC2W + D, :]          # [D, HID]
    fc2b = w32_ref[R_FC2B:R_FC2B + 1, :]          # [1, HID]
    taps = [w16_ref[R_TAPS + t * D:R_TAPS + (t + 1) * D, :] for t in range(KS * KS)]

    # ---- masks / constants hoisted out of the batch loop (VPU work, reused) ----
    row = lax.broadcasted_iota(jnp.int32, (SS, D), 0)
    lane = lax.broadcasted_iota(jnp.int32, (SS, D), 1)
    xpos = row % S
    m_left = xpos >= 1            # conv tap dx = -1 stays in-bounds
    m_right = xpos <= S - 2       # conv tap dx = +1 stays in-bounds
    m_br1 = lane < CH1            # keep branch1 lanes of the merged 1x1 output
    halo = jnp.zeros((PADROWS, D), f32)

    for b in range(x_ref.shape[0]):
        # ---- D_fc1 + gelu on all 72 rows (rows >= P are padding, dropped host-side) ----
        x0 = _gelu(jnp.dot(x_ref[b], fc1w, preferred_element_type=f32) + fc1b)  # [72, D]
        xs = x0[0:SS, :]                           # spatial tokens, 8-aligned slice

        # ---- merged 1x1 convs (branch1 | branch2-reduce), BN folded, relu ----
        y1 = jnp.maximum(jnp.dot(xs, w1x1, preferred_element_type=f32) + b1x1, 0.0)

        # ---- branch2 3x3 conv: zero-halo row shifts + boundary masks + 9 MXU dots ----
        # Tap weights are [D, D] with rows 0:CH1 and cols 0:CH1 zeroed, so branch1 lanes
        # of y1 contribute nothing and the conv result lands directly in lanes CH1:D.
        ypad = jnp.concatenate([halo, y1, halo], axis=0)          # [96, D]
        acc = None
        for ky in range(KS):
            for kx in range(KS):
                s = (ky - PAD) * S + (kx - PAD)                   # row shift for this tap
                shifted = ypad[PADROWS + s:PADROWS + s + SS, :]   # zero-filled y-boundary
                if kx - PAD == 1:
                    shifted = jnp.where(m_right, shifted, 0.0)    # x-boundary mask
                elif kx - PAD == -1:
                    shifted = jnp.where(m_left, shifted, 0.0)
                contrib = jnp.dot(shifted, taps[ky * KS + kx],
                                  preferred_element_type=f32)
                acc = contrib if acc is None else acc + contrib
        conv = jnp.maximum(acc + b3, 0.0)          # [SS, D]; lanes 0:CH1 stay zero

        # ---- residual + D_fc2: single full-height dot, ONE unmasked store ----
        resid_sp = jnp.where(m_br1, y1, 0.0) + conv                    # concat(br1, br2)
        resid = jnp.concatenate([resid_sp, x0[SS:PPAD, :]], axis=0)    # row 64 = cls x0
        out = jnp.dot(x0 + resid, fc2w, preferred_element_type=f32) + fc2b   # [72, HID]
        o_ref[b] = out


# ---------------------------- pallas_call wrapper ----------------------------

def conv_adapter3_pallas(x, p):
    Bb = x.shape[0]
    # Layout plumbing (outside the kernel): spatial tokens to rows 0..63, cls token to
    # the 8-aligned row 64, zero-pad to 72 rows so every kernel load/store is unmasked.
    x_re = jnp.concatenate(
        [x[:, 1:P, :], x[:, 0:1, :], jnp.zeros((Bb, PPAD - P, HID), x.dtype)], axis=1)

    out = pl.pallas_call(
        _adapter_kernel,
        out_shape=jax.ShapeDtypeStruct((Bb, PPAD, HID), jnp.float32),
        in_specs=[pl.BlockSpec(memory_space=pltpu.MemorySpace.VMEM)] * 3,
        out_specs=pl.BlockSpec(memory_space=pltpu.MemorySpace.VMEM),
    )(x_re, p['w16'], p['w32'])

    # Undo the re-layout: cls token back to row 0, drop the padding rows.
    return jnp.concatenate([out[:, SS:SS + 1, :], out[:, 0:SS, :]], axis=1)


# ---------------------------- pure-JAX reference ----------------------------

def _bn_relu_ref(y, gamma, beta, mean, var):
    y = gamma * (y - mean) * lax.rsqrt(var + EPS) + beta
    return jnp.maximum(y, 0.0)


def _conv_ref(x_nhwc, w_oihw, b, padding):
    w_hwio = jnp.transpose(w_oihw, (2, 3, 1, 0))
    y = lax.conv_general_dilated(
        x_nhwc, w_hwio, window_strides=(1, 1),
        padding=[(padding, padding)] * 2,
        dimension_numbers=('NHWC', 'HWIO', 'NHWC'),
        precision=lax.Precision.HIGHEST)
    return y + b


def conv_adapter3_ref(x, raw):
    x0 = jnp.einsum('bph,hd->bpd', x, raw['fc1_w'],
                    precision=lax.Precision.HIGHEST) + raw['fc1_b']
    x0 = _gelu(x0)
    Bb, Pp, Dd = x0.shape
    Ss = int(math.sqrt(Pp - 1))
    xs = x0[:, 1:, :].reshape(Bb, Ss, Ss, Dd)
    b1 = _bn_relu_ref(_conv_ref(xs, raw['b1_conv_w'], raw['b1_conv_b'], 0), *raw['b1_bn'])
    b2 = _bn_relu_ref(_conv_ref(xs, raw['b2a_conv_w'], raw['b2a_conv_b'], 0), *raw['b2a_bn'])
    b2 = _bn_relu_ref(_conv_ref(b2, raw['b2b_conv_w'], raw['b2b_conv_b'], PAD), *raw['b2b_bn'])
    out = jnp.concatenate([b1, b2], axis=-1).reshape(Bb, Ss * Ss, Dd)
    out = jnp.concatenate([x0[:, 0:1, :], out], axis=1)
    out = out + x0
    out = jnp.einsum('bpd,dh->bph', out, raw['fc2_w'],
                     precision=lax.Precision.HIGHEST) + raw['fc2_b']
    return out


# ---------------------------- params ----------------------------

def make_params(key):
    ks = jax.random.split(key, 24)

    def n(i, shape, s=0.2):
        return (s * jax.random.normal(ks[i], shape)).astype(jnp.float32)

    raw = {
        'fc1_w': n(0, (HID, D)),       # stored [in, out]: y = x @ fc1_w + fc1_b
        'fc1_b': n(1, (D,)),
        'fc2_w': n(2, (D, HID)),
        'fc2_b': n(3, (HID,)),
        'b1_conv_w': n(4, (CH1, D, 1, 1)),            # PyTorch OIHW
        'b1_conv_b': n(5, (CH1,)),
        'b1_bn': (1.0 + n(6, (CH1,), 0.1), n(7, (CH1,), 0.1),
                  n(8, (CH1,), 0.1), 1.0 + jnp.abs(n(9, (CH1,), 0.2))),
        'b2a_conv_w': n(10, (CH3RED, D, 1, 1)),
        'b2a_conv_b': n(11, (CH3RED,)),
        'b2a_bn': (1.0 + n(12, (CH3RED,), 0.1), n(13, (CH3RED,), 0.1),
                   n(14, (CH3RED,), 0.1), 1.0 + jnp.abs(n(15, (CH3RED,), 0.2))),
        'b2b_conv_w': n(16, (CH3, CH3RED, KS, KS)),
        'b2b_conv_b': n(17, (CH3,)),
        'b2b_bn': (1.0 + n(18, (CH3,), 0.1), n(19, (CH3,), 0.1),
                   n(20, (CH3,), 0.1), 1.0 + jnp.abs(n(21, (CH3,), 0.2))),
    }

    def fold(w, b, bn):   # eval-mode BN folded into conv weight/bias
        gamma, beta, mean, var = bn
        scale = gamma * lax.rsqrt(var + EPS)
        return w * scale[:, None, None, None], (b - mean) * scale + beta

    w1, b1 = fold(raw['b1_conv_w'], raw['b1_conv_b'], raw['b1_bn'])
    w2a, b2a = fold(raw['b2a_conv_w'], raw['b2a_conv_b'], raw['b2a_bn'])
    w2b, b2b = fold(raw['b2b_conv_w'], raw['b2b_conv_b'], raw['b2b_bn'])

    # branch1 1x1 and branch2-reduce 1x1 share the same input -> one merged matmul
    w1x1 = jnp.concatenate([w1[:, :, 0, 0].T, w2a[:, :, 0, 0].T], axis=1)   # [D, D]
    b1x1 = jnp.concatenate([b1, b2a])                                       # [D]

    # 3x3 conv taps padded to [D, D]: rows 0:CH1 (branch1 input lanes) and cols 0:CH1
    # (branch1 output lanes) are zero, so the conv output lands in lanes CH1:D.
    # tap t = ky*KS + kx,  taps[t, CH1+ci, CH1+co] = w2b[co, ci, ky, kx]
    w2b_t = jnp.transpose(w2b, (2, 3, 1, 0)).reshape(KS * KS, CH3RED, CH3)
    taps = jnp.zeros((KS * KS, D, D), jnp.float32).at[:, CH1:, CH1:].set(w2b_t)
    b3pad = jnp.zeros((D,), jnp.float32).at[CH1:].set(b2b)

    # packed slabs (one 16-lane, one 32-lane) -> 2 weight DMAs total
    w16 = jnp.zeros((N16, D), jnp.float32)
    w16 = w16.at[R_FC1W:R_FC1W + HID, :].set(raw['fc1_w'])
    w16 = w16.at[R_FC1B, :].set(raw['fc1_b'])
    w16 = w16.at[R_W1X1:R_W1X1 + D, :].set(w1x1)
    w16 = w16.at[R_B1X1, :].set(b1x1)
    w16 = w16.at[R_TAPS:R_TAPS + KS * KS * D, :].set(taps.reshape(KS * KS * D, D))
    w16 = w16.at[R_B3, :].set(b3pad)

    w32 = jnp.zeros((N32, HID), jnp.float32)
    w32 = w32.at[R_FC2W:R_FC2W + D, :].set(raw['fc2_w'])
    w32 = w32.at[R_FC2B, :].set(raw['fc2_b'])

    folded = {'w16': w16, 'w32': w32}
    return raw, folded


# ---------------------------- main ----------------------------

if __name__ == "__main__":
    key = jax.random.PRNGKey(0)
    k_x, k_p = jax.random.split(key)
    x = jax.random.normal(k_x, (B, P, HID), dtype=jnp.float32)
    raw, folded = make_params(k_p)

    out = jax.jit(conv_adapter3_pallas)(x, folded)
    out = jax.block_until_ready(out)
    assert out.shape == (B, P, HID)

    ref = conv_adapter3_ref(x, raw)
    max_err = float(jnp.max(jnp.abs(out - ref)))
    if not bool(jnp.allclose(out, ref, atol=2e-2, rtol=2e-2)):
        raise AssertionError(f"Pallas output mismatch vs reference, max abs err = {max_err}")

    print("KERNEL_OK")
</pallas_src>

<mosaic_0001>
module attributes {stable_mosaic.version = 11 : i64} {
  func.func @_adapter_kernel(%arg0: memref<2x72x32xf32, #tpu.memory_space<vmem>>, %arg1: memref<216x16xf32, #tpu.memory_space<vmem>>, %arg2: memref<24x32xf32, #tpu.memory_space<vmem>>, %arg3: memref<2x72x32xf32, #tpu.memory_space<vmem>>) attributes {dimension_semantics = [], scalar_prefetch = 0 : i64, scratch_operands = 0 : i64, tpu.core_type = #tpu.core_type<tc>} {
    %c0 = arith.constant 0 : index
    %c0_0 = arith.constant 0 : index
    %0 = vector.load %arg1[%c0, %c0_0] : memref<216x16xf32, #tpu.memory_space<vmem>>, vector<32x16xf32>
    %c32 = arith.constant 32 : index
    %c0_1 = arith.constant 0 : index
    %1 = vector.load %arg1[%c32, %c0_1] : memref<216x16xf32, #tpu.memory_space<vmem>>, vector<1x16xf32>
    %c40 = arith.constant 40 : index
    %c0_2 = arith.constant 0 : index
    %2 = vector.load %arg1[%c40, %c0_2] : memref<216x16xf32, #tpu.memory_space<vmem>>, vector<16x16xf32>
    %c56 = arith.constant 56 : index
    %c0_3 = arith.constant 0 : index
    %3 = vector.load %arg1[%c56, %c0_3] : memref<216x16xf32, #tpu.memory_space<vmem>>, vector<1x16xf32>
    %c208 = arith.constant 208 : index
    %c0_4 = arith.constant 0 : index
    %4 = vector.load %arg1[%c208, %c0_4] : memref<216x16xf32, #tpu.memory_space<vmem>>, vector<1x16xf32>
    %c0_5 = arith.constant 0 : index
    %c0_6 = arith.constant 0 : index
    %5 = vector.load %arg2[%c0_5, %c0_6] : memref<24x32xf32, #tpu.memory_space<vmem>>, vector<16x32xf32>
    %c16 = arith.constant 16 : index
    %c0_7 = arith.constant 0 : index
    %6 = vector.load %arg2[%c16, %c0_7] : memref<24x32xf32, #tpu.memory_space<vmem>>, vector<1x32xf32>
    %c64 = arith.constant 64 : index
    %c0_8 = arith.constant 0 : index
    %7 = vector.load %arg1[%c64, %c0_8] : memref<216x16xf32, #tpu.memory_space<vmem>>, vector<16x16xf32>
    %c80 = arith.constant 80 : index
    %c0_9 = arith.constant 0 : index
    %8 = vector.load %arg1[%c80, %c0_9] : memref<216x16xf32, #tpu.memory_space<vmem>>, vector<16x16xf32>
    %c96 = arith.constant 96 : index
    %c0_10 = arith.constant 0 : index
    %9 = vector.load %arg1[%c96, %c0_10] : memref<216x16xf32, #tpu.memory_space<vmem>>, vector<16x16xf32>
    %c112 = arith.constant 112 : index
    %c0_11 = arith.constant 0 : index
    %10 = vector.load %arg1[%c112, %c0_11] : memref<216x16xf32, #tpu.memory_space<vmem>>, vector<16x16xf32>
    %c128 = arith.constant 128 : index
    %c0_12 = arith.constant 0 : index
    %11 = vector.load %arg1[%c128, %c0_12] : memref<216x16xf32, #tpu.memory_space<vmem>>, vector<16x16xf32>
    %c144 = arith.constant 144 : index
    %c0_13 = arith.constant 0 : index
    %12 = vector.load %arg1[%c144, %c0_13] : memref<216x16xf32, #tpu.memory_space<vmem>>, vector<16x16xf32>
    %c160 = arith.constant 160 : index
    %c0_14 = arith.constant 0 : index
    %13 = vector.load %arg1[%c160, %c0_14] : memref<216x16xf32, #tpu.memory_space<vmem>>, vector<16x16xf32>
    %c176 = arith.constant 176 : index
    %c0_15 = arith.constant 0 : index
    %14 = vector.load %arg1[%c176, %c0_15] : memref<216x16xf32, #tpu.memory_space<vmem>>, vector<16x16xf32>
    %c192 = arith.constant 192 : index
    %c0_16 = arith.constant 0 : index
    %15 = vector.load %arg1[%c192, %c0_16] : memref<216x16xf32, #tpu.memory_space<vmem>>, vector<16x16xf32>
    %16 = tpu.iota {dimensions = array<i32: 0>} : vector<64x16xi32>
    %17 = tpu.iota {dimensions = array<i32: 1>} : vector<64x16xi32>
    %c8_i32 = arith.constant 8 : i32
    %c0_i32 = arith.constant 0 : i32
    %18 = arith.cmpi eq, %c8_i32, %c0_i32 : i32
    %c1_i32 = arith.constant 1 : i32
    %19 = arith.select %18, %c1_i32, %c8_i32 : i32
    %20 = vector.broadcast %19 : i32 to vector<64x16xi32>
    %21 = arith.remsi %16, %20 : vector<64x16xi32>
    %c0_i32_17 = arith.constant 0 : i32
    %22 = vector.broadcast %c0_i32_17 : i32 to vector<64x16xi32>
    %23 = arith.cmpi ne, %21, %22 : vector<64x16xi32>
    %c0_i32_18 = arith.constant 0 : i32
    %24 = vector.broadcast %c0_i32_18 : i32 to vector<64x16xi32>
    %25 = arith.cmpi slt, %21, %24 : vector<64x16xi32>
    %c0_i32_19 = arith.constant 0 : i32
    %26 = arith.cmpi slt, %19, %c0_i32_19 : i32
    %27 = vector.broadcast %26 : i1 to vector<64x16xi1>
    %28 = vector.broadcast %27 : vector<64x16xi1> to vector<64x16xi1>
    %29 = arith.xori %25, %28 : vector<64x16xi1>
    %30 = arith.andi %29, %23 : vector<64x16xi1>
    %31 = vector.broadcast %19 : i32 to vector<64x16xi32>
    %32 = arith.addi %21, %31 : vector<64x16xi32>
    %33 = arith.select %30, %32, %21 : vector<64x16xi1>, vector<64x16xi32>
    %c1_i32_20 = arith.constant 1 : i32
    %34 = vector.broadcast %c1_i32_20 : i32 to vector<64x16xi32>
    %35 = arith.cmpi sge, %33, %34 : vector<64x16xi32>
    %c6_i32 = arith.constant 6 : i32
    %36 = vector.broadcast %c6_i32 : i32 to vector<64x16xi32>
    %37 = arith.cmpi sle, %33, %36 : vector<64x16xi32>
    %c8_i32_21 = arith.constant 8 : i32
    %38 = vector.broadcast %c8_i32_21 : i32 to vector<64x16xi32>
    %39 = arith.cmpi slt, %17, %38 : vector<64x16xi32>
    %cst = arith.constant 0.000000e+00 : f32
    %40 = vector.broadcast %cst : f32 to vector<16x16xf32>
    %c0_22 = arith.constant 0 : index
    %c0_23 = arith.constant 0 : index
    %c0_24 = arith.constant 0 : index
    %41 = vector.load %arg0[%c0_22, %c0_23, %c0_24] : memref<2x72x32xf32, #tpu.memory_space<vmem>>, vector<1x72x32xf32>
    %42 = vector.shape_cast %41 : vector<1x72x32xf32> to vector<72x32xf32>
    %cst_25 = arith.constant dense<0.000000e+00> : vector<72x16xf32>
    %43 = tpu.matmul %42, %0, %cst_25 {dimension_numbers = #tpu.dot_dimension_numbers<[1], [0], [0], [1], [0, 0, 1, 1], [], []>} : vector<72x32xf32>, vector<32x16xf32>, vector<72x16xf32> -> vector<72x16xf32>
    %44 = vector.broadcast %1 : vector<1x16xf32> to vector<72x16xf32>
    %45 = arith.addf %43, %44 : vector<72x16xf32>
    %cst_26 = arith.constant 5.000000e-01 : f32
    %46 = vector.broadcast %cst_26 : f32 to vector<72x16xf32>
    %47 = arith.mulf %46, %45 : vector<72x16xf32>
    %48 = arith.mulf %45, %45 : vector<72x16xf32>
    %49 = arith.mulf %48, %45 : vector<72x16xf32>
    %cst_27 = arith.constant 4.471500e-02 : f32
    %50 = vector.broadcast %cst_27 : f32 to vector<72x16xf32>
    %51 = arith.mulf %50, %49 : vector<72x16xf32>
    %52 = arith.addf %45, %51 : vector<72x16xf32>
    %cst_28 = arith.constant 0.797884583 : f32
    %53 = vector.broadcast %cst_28 : f32 to vector<72x16xf32>
    %54 = arith.mulf %53, %52 : vector<72x16xf32>
    %55 = math.tanh %54 : vector<72x16xf32>
    %cst_29 = arith.constant 1.000000e+00 : f32
    %56 = vector.broadcast %cst_29 : f32 to vector<72x16xf32>
    %57 = arith.addf %56, %55 : vector<72x16xf32>
    %58 = arith.mulf %47, %57 : vector<72x16xf32>
    %59 = vector.extract_strided_slice %58 {offsets = [0, 0], sizes = [64, 16], strides = [1, 1]} : vector<72x16xf32> to vector<64x16xf32>
    %cst_30 = arith.constant dense<0.000000e+00> : vector<64x16xf32>
    %60 = tpu.matmul %59, %2, %cst_30 {dimension_numbers = #tpu.dot_dimension_numbers<[1], [0], [0], [1], [0, 0, 1, 1], [], []>} : vector<64x16xf32>, vector<16x16xf32>, vector<64x16xf32> -> vector<64x16xf32>
    %61 = vector.broadcast %3 : vector<1x16xf32> to vector<64x16xf32>
    %62 = arith.addf %60, %61 : vector<64x16xf32>
    %cst_31 = arith.constant 0.000000e+00 : f32
    %63 = vector.broadcast %cst_31 : f32 to vector<64x16xf32>
    %64 = arith.maximumf %62, %63 : vector<64x16xf32>
    %65 = tpu.concatenate %40, %64, %40 in 0 : vector<16x16xf32>, vector<64x16xf32>, vector<16x16xf32> -> vector<96x16xf32>
    %66 = vector.extract_strided_slice %65 {offsets = [7, 0], sizes = [64, 16], strides = [1, 1]} : vector<96x16xf32> to vector<64x16xf32>
    %cst_32 = arith.constant 0.000000e+00 : f32
    %67 = vector.broadcast %cst_32 : f32 to vector<64x16xf32>
    %68 = arith.select %35, %66, %67 : vector<64x16xi1>, vector<64x16xf32>
    %cst_33 = arith.constant dense<0.000000e+00> : vector<64x16xf32>
    %69 = tpu.matmul %68, %7, %cst_33 {dimension_numbers = #tpu.dot_dimension_numbers<[1], [0], [0], [1], [0, 0, 1, 1], [], []>} : vector<64x16xf32>, vector<16x16xf32>, vector<64x16xf32> -> vector<64x16xf32>
    %70 = vector.extract_strided_slice %65 {offsets = [8, 0], sizes = [64, 16], strides = [1, 1]} : vector<96x16xf32> to vector<64x16xf32>
    %cst_34 = arith.constant dense<0.000000e+00> : vector<64x16xf32>
    %71 = tpu.matmul %70, %8, %cst_34 {dimension_numbers = #tpu.dot_dimension_numbers<[1], [0], [0], [1], [0, 0, 1, 1], [], []>} : vector<64x16xf32>, vector<16x16xf32>, vector<64x16xf32> -> vector<64x16xf32>
    %72 = arith.addf %69, %71 : vector<64x16xf32>
    %73 = vector.extract_strided_slice %65 {offsets = [9, 0], sizes = [64, 16], strides = [1, 1]} : vector<96x16xf32> to vector<64x16xf32>
    %cst_35 = arith.constant 0.000000e+00 : f32
    %74 = vector.broadcast %cst_35 : f32 to vector<64x16xf32>
    %75 = arith.select %37, %73, %74 : vector<64x16xi1>, vector<64x16xf32>
    %cst_36 = arith.constant dense<0.000000e+00> : vector<64x16xf32>
    %76 = tpu.matmul %75, %9, %cst_36 {dimension_numbers = #tpu.dot_dimension_numbers<[1], [0], [0], [1], [0, 0, 1, 1], [], []>} : vector<64x16xf32>, vector<16x16xf32>, vector<64x16xf32> -> vector<64x16xf32>
    %77 = arith.addf %72, %76 : vector<64x16xf32>
    %78 = vector.extract_strided_slice %65 {offsets = [15, 0], sizes = [64, 16], strides = [1, 1]} : vector<96x16xf32> to vector<64x16xf32>
    %cst_37 = arith.constant 0.000000e+00 : f32
    %79 = vector.broadcast %cst_37 : f32 to vector<64x16xf32>
    %80 = arith.select %35, %78, %79 : vector<64x16xi1>, vector<64x16xf32>
    %cst_38 = arith.constant dense<0.000000e+00> : vector<64x16xf32>
    %81 = tpu.matmul %80, %10, %cst_38 {dimension_numbers = #tpu.dot_dimension_numbers<[1], [0], [0], [1], [0, 0, 1, 1], [], []>} : vector<64x16xf32>, vector<16x16xf32>, vector<64x16xf32> -> vector<64x16xf32>
    %82 = arith.addf %77, %81 : vector<64x16xf32>
    %83 = vector.extract_strided_slice %65 {offsets = [16, 0], sizes = [64, 16], strides = [1, 1]} : vector<96x16xf32> to vector<64x16xf32>
    %cst_39 = arith.constant dense<0.000000e+00> : vector<64x16xf32>
    %84 = tpu.matmul %83, %11, %cst_39 {dimension_numbers = #tpu.dot_dimension_numbers<[1], [0], [0], [1], [0, 0, 1, 1], [], []>} : vector<64x16xf32>, vector<16x16xf32>, vector<64x16xf32> -> vector<64x16xf32>
    %85 = arith.addf %82, %84 : vector<64x16xf32>
    %86 = vector.extract_strided_slice %65 {offsets = [17, 0], sizes = [64, 16], strides = [1, 1]} : vector<96x16xf32> to vector<64x16xf32>
    %cst_40 = arith.constant 0.000000e+00 : f32
    %87 = vector.broadcast %cst_40 : f32 to vector<64x16xf32>
    %88 = arith.select %37, %86, %87 : vector<64x16xi1>, vector<64x16xf32>
    %cst_41 = arith.constant dense<0.000000e+00> : vector<64x16xf32>
    %89 = tpu.matmul %88, %12, %cst_41 {dimension_numbers = #tpu.dot_dimension_numbers<[1], [0], [0], [1], [0, 0, 1, 1], [], []>} : vector<64x16xf32>, vector<16x16xf32>, vector<64x16xf32> -> vector<64x16xf32>
    %90 = arith.addf %85, %89 : vector<64x16xf32>
    %91 = vector.extract_strided_slice %65 {offsets = [23, 0], sizes = [64, 16], strides = [1, 1]} : vector<96x16xf32> to vector<64x16xf32>
    %cst_42 = arith.constant 0.000000e+00 : f32
    %92 = vector.broadcast %cst_42 : f32 to vector<64x16xf32>
    %93 = arith.select %35, %91, %92 : vector<64x16xi1>, vector<64x16xf32>
    %cst_43 = arith.constant dense<0.000000e+00> : vector<64x16xf32>
    %94 = tpu.matmul %93, %13, %cst_43 {dimension_numbers = #tpu.dot_dimension_numbers<[1], [0], [0], [1], [0, 0, 1, 1], [], []>} : vector<64x16xf32>, vector<16x16xf32>, vector<64x16xf32> -> vector<64x16xf32>
    %95 = arith.addf %90, %94 : vector<64x16xf32>
    %96 = vector.extract_strided_slice %65 {offsets = [24, 0], sizes = [64, 16], strides = [1, 1]} : vector<96x16xf32> to vector<64x16xf32>
    %cst_44 = arith.constant dense<0.000000e+00> : vector<64x16xf32>
    %97 = tpu.matmul %96, %14, %cst_44 {dimension_numbers = #tpu.dot_dimension_numbers<[1], [0], [0], [1], [0, 0, 1, 1], [], []>} : vector<64x16xf32>, vector<16x16xf32>, vector<64x16xf32> -> vector<64x16xf32>
    %98 = arith.addf %95, %97 : vector<64x16xf32>
    %99 = vector.extract_strided_slice %65 {offsets = [25, 0], sizes = [64, 16], strides = [1, 1]} : vector<96x16xf32> to vector<64x16xf32>
    %cst_45 = arith.constant 0.000000e+00 : f32
    %100 = vector.broadcast %cst_45 : f32 to vector<64x16xf32>
    %101 = arith.select %37, %99, %100 : vector<64x16xi1>, vector<64x16xf32>
    %cst_46 = arith.constant dense<0.000000e+00> : vector<64x16xf32>
    %102 = tpu.matmul %101, %15, %cst_46 {dimension_numbers = #tpu.dot_dimension_numbers<[1], [0], [0], [1], [0, 0, 1, 1], [], []>} : vector<64x16xf32>, vector<16x16xf32>, vector<64x16xf32> -> vector<64x16xf32>
    %103 = arith.addf %98, %102 : vector<64x16xf32>
    %104 = vector.broadcast %4 : vector<1x16xf32> to vector<64x16xf32>
    %105 = arith.addf %103, %104 : vector<64x16xf32>
    %cst_47 = arith.constant 0.000000e+00 : f32
    %106 = vector.broadcast %cst_47 : f32 to vector<64x16xf32>
    %107 = arith.maximumf %105, %106 : vector<64x16xf32>
    %cst_48 = arith.constant 0.000000e+00 : f32
    %108 = vector.broadcast %cst_48 : f32 to vector<64x16xf32>
    %109 = arith.select %39, %64, %108 : vector<64x16xi1>, vector<64x16xf32>
    %110 = arith.addf %109, %107 : vector<64x16xf32>
    %111 = vector.extract_strided_slice %58 {offsets = [64, 0], sizes = [8, 16], strides = [1, 1]} : vector<72x16xf32> to vector<8x16xf32>
    %112 = tpu.concatenate %110, %111 in 0 : vector<64x16xf32>, vector<8x16xf32> -> vector<72x16xf32>
    %113 = arith.addf %58, %112 : vector<72x16xf32>
    %cst_49 = arith.constant dense<0.000000e+00> : vector<72x32xf32>
    %114 = tpu.matmul %113, %5, %cst_49 {dimension_numbers = #tpu.dot_dimension_numbers<[1], [0], [0], [1], [0, 0, 1, 1], [], []>} : vector<72x16xf32>, vector<16x32xf32>, vector<72x32xf32> -> vector<72x32xf32>
    %115 = vector.broadcast %6 : vector<1x32xf32> to vector<72x32xf32>
    %116 = arith.addf %114, %115 : vector<72x32xf32>
    %c0_50 = arith.constant 0 : index
    %c0_51 = arith.constant 0 : index
    %c0_52 = arith.constant 0 : index
    %117 = vector.load %arg3[%c0_50, %c0_51, %c0_52] : memref<2x72x32xf32, #tpu.memory_space<vmem>>, vector<1x72x32xf32>
    %118 = vector.shape_cast %117 : vector<1x72x32xf32> to vector<72x32xf32>
    %119 = vector.shape_cast %116 : vector<72x32xf32> to vector<1x72x32xf32>
    tpu.vector_store %arg3[%c0_50, %c0_51, %c0_52], %119 {strides = array<i32>} : memref<2x72x32xf32, #tpu.memory_space<vmem>>, vector<1x72x32xf32>,
    %c1 = arith.constant 1 : index
    %c0_53 = arith.constant 0 : index
    %c0_54 = arith.constant 0 : index
    %120 = vector.load %arg0[%c1, %c0_53, %c0_54] : memref<2x72x32xf32, #tpu.memory_space<vmem>>, vector<1x72x32xf32>
    %121 = vector.shape_cast %120 : vector<1x72x32xf32> to vector<72x32xf32>
    %cst_55 = arith.constant dense<0.000000e+00> : vector<72x16xf32>
    %122 = tpu.matmul %121, %0, %cst_55 {dimension_numbers = #tpu.dot_dimension_numbers<[1], [0], [0], [1], [0, 0, 1, 1], [], []>} : vector<72x32xf32>, vector<32x16xf32>, vector<72x16xf32> -> vector<72x16xf32>
    %123 = vector.broadcast %1 : vector<1x16xf32> to vector<72x16xf32>
    %124 = arith.addf %122, %123 : vector<72x16xf32>
    %cst_56 = arith.constant 5.000000e-01 : f32
    %125 = vector.broadcast %cst_56 : f32 to vector<72x16xf32>
    %126 = arith.mulf %125, %124 : vector<72x16xf32>
    %127 = arith.mulf %124, %124 : vector<72x16xf32>
    %128 = arith.mulf %127, %124 : vector<72x16xf32>
    %cst_57 = arith.constant 4.471500e-02 : f32
    %129 = vector.broadcast %cst_57 : f32 to vector<72x16xf32>
    %130 = arith.mulf %129, %128 : vector<72x16xf32>
    %131 = arith.addf %124, %130 : vector<72x16xf32>
    %cst_58 = arith.constant 0.797884583 : f32
    %132 = vector.broadcast %cst_58 : f32 to vector<72x16xf32>
    %133 = arith.mulf %132, %131 : vector<72x16xf32>
    %134 = math.tanh %133 : vector<72x16xf32>
    %cst_59 = arith.constant 1.000000e+00 : f32
    %135 = vector.broadcast %cst_59 : f32 to vector<72x16xf32>
    %136 = arith.addf %135, %134 : vector<72x16xf32>
    %137 = arith.mulf %126, %136 : vector<72x16xf32>
    %138 = vector.extract_strided_slice %137 {offsets = [0, 0], sizes = [64, 16], strides = [1, 1]} : vector<72x16xf32> to vector<64x16xf32>
    %cst_60 = arith.constant dense<0.000000e+00> : vector<64x16xf32>
    %139 = tpu.matmul %138, %2, %cst_60 {dimension_numbers = #tpu.dot_dimension_numbers<[1], [0], [0], [1], [0, 0, 1, 1], [], []>} : vector<64x16xf32>, vector<16x16xf32>, vector<64x16xf32> -> vector<64x16xf32>
    %140 = vector.broadcast %3 : vector<1x16xf32> to vector<64x16xf32>
    %141 = arith.addf %139, %140 : vector<64x16xf32>
    %cst_61 = arith.constant 0.000000e+00 : f32
    %142 = vector.broadcast %cst_61 : f32 to vector<64x16xf32>
    %143 = arith.maximumf %141, %142 : vector<64x16xf32>
    %144 = tpu.concatenate %40, %143, %40 in 0 : vector<16x16xf32>, vector<64x16xf32>, vector<16x16xf32> -> vector<96x16xf32>
    %145 = vector.extract_strided_slice %144 {offsets = [7, 0], sizes = [64, 16], strides = [1, 1]} : vector<96x16xf32> to vector<64x16xf32>
    %cst_62 = arith.constant 0.000000e+00 : f32
    %146 = vector.broadcast %cst_62 : f32 to vector<64x16xf32>
    %147 = arith.select %35, %145, %146 : vector<64x16xi1>, vector<64x16xf32>
    %cst_63 = arith.constant dense<0.000000e+00> : vector<64x16xf32>
    %148 = tpu.matmul %147, %7, %cst_63 {dimension_numbers = #tpu.dot_dimension_numbers<[1], [0], [0], [1], [0, 0, 1, 1], [], []>} : vector<64x16xf32>, vector<16x16xf32>, vector<64x16xf32> -> vector<64x16xf32>
    %149 = vector.extract_strided_slice %144 {offsets = [8, 0], sizes = [64, 16], strides = [1, 1]} : vector<96x16xf32> to vector<64x16xf32>
    %cst_64 = arith.constant dense<0.000000e+00> : vector<64x16xf32>
    %150 = tpu.matmul %149, %8, %cst_64 {dimension_numbers = #tpu.dot_dimension_numbers<[1], [0], [0], [1], [0, 0, 1, 1], [], []>} : vector<64x16xf32>, vector<16x16xf32>, vector<64x16xf32> -> vector<64x16xf32>
    %151 = arith.addf %148, %150 : vector<64x16xf32>
    %152 = vector.extract_strided_slice %144 {offsets = [9, 0], sizes = [64, 16], strides = [1, 1]} : vector<96x16xf32> to vector<64x16xf32>
    %cst_65 = arith.constant 0.000000e+00 : f32
    %153 = vector.broadcast %cst_65 : f32 to vector<64x16xf32>
    %154 = arith.select %37, %152, %153 : vector<64x16xi1>, vector<64x16xf32>
    %cst_66 = arith.constant dense<0.000000e+00> : vector<64x16xf32>
    %155 = tpu.matmul %154, %9, %cst_66 {dimension_numbers = #tpu.dot_dimension_numbers<[1], [0], [0], [1], [0, 0, 1, 1], [], []>} : vector<64x16xf32>, vector<16x16xf32>, vector<64x16xf32> -> vector<64x16xf32>
    %156 = arith.addf %151, %155 : vector<64x16xf32>
    %157 = vector.extract_strided_slice %144 {offsets = [15, 0], sizes = [64, 16], strides = [1, 1]} : vector<96x16xf32> to vector<64x16xf32>
    %cst_67 = arith.constant 0.000000e+00 : f32
    %158 = vector.broadcast %cst_67 : f32 to vector<64x16xf32>
    %159 = arith.select %35, %157, %158 : vector<64x16xi1>, vector<64x16xf32>
    %cst_68 = arith.constant dense<0.000000e+00> : vector<64x16xf32>
    %160 = tpu.matmul %159, %10, %cst_68 {dimension_numbers = #tpu.dot_dimension_numbers<[1], [0], [0], [1], [0, 0, 1, 1], [], []>} : vector<64x16xf32>, vector<16x16xf32>, vector<64x16xf32> -> vector<64x16xf32>
    %161 = arith.addf %156, %160 : vector<64x16xf32>
    %162 = vector.extract_strided_slice %144 {offsets = [16, 0], sizes = [64, 16], strides = [1, 1]} : vector<96x16xf32> to vector<64x16xf32>
    %cst_69 = arith.constant dense<0.000000e+00> : vector<64x16xf32>
    %163 = tpu.matmul %162, %11, %cst_69 {dimension_numbers = #tpu.dot_dimension_numbers<[1], [0], [0], [1], [0, 0, 1, 1], [], []>} : vector<64x16xf32>, vector<16x16xf32>, vector<64x16xf32> -> vector<64x16xf32>
    %164 = arith.addf %161, %163 : vector<64x16xf32>
    %165 = vector.extract_strided_slice %144 {offsets = [17, 0], sizes = [64, 16], strides = [1, 1]} : vector<96x16xf32> to vector<64x16xf32>
    %cst_70 = arith.constant 0.000000e+00 : f32
    %166 = vector.broadcast %cst_70 : f32 to vector<64x16xf32>
    %167 = arith.select %37, %165, %166 : vector<64x16xi1>, vector<64x16xf32>
    %cst_71 = arith.constant dense<0.000000e+00> : vector<64x16xf32>
    %168 = tpu.matmul %167, %12, %cst_71 {dimension_numbers = #tpu.dot_dimension_numbers<[1], [0], [0], [1], [0, 0, 1, 1], [], []>} : vector<64x16xf32>, vector<16x16xf32>, vector<64x16xf32> -> vector<64x16xf32>
    %169 = arith.addf %164, %168 : vector<64x16xf32>
    %170 = vector.extract_strided_slice %144 {offsets = [23, 0], sizes = [64, 16], strides = [1, 1]} : vector<96x16xf32> to vector<64x16xf32>
    %cst_72 = arith.constant 0.000000e+00 : f32
    %171 = vector.broadcast %cst_72 : f32 to vector<64x16xf32>
    %172 = arith.select %35, %170, %171 : vector<64x16xi1>, vector<64x16xf32>
    %cst_73 = arith.constant dense<0.000000e+00> : vector<64x16xf32>
    %173 = tpu.matmul %172, %13, %cst_73 {dimension_numbers = #tpu.dot_dimension_numbers<[1], [0], [0], [1], [0, 0, 1, 1], [], []>} : vector<64x16xf32>, vector<16x16xf32>, vector<64x16xf32> -> vector<64x16xf32>
    %174 = arith.addf %169, %173 : vector<64x16xf32>
    %175 = vector.extract_strided_slice %144 {offsets = [24, 0], sizes = [64, 16], strides = [1, 1]} : vector<96x16xf32> to vector<64x16xf32>
    %cst_74 = arith.constant dense<0.000000e+00> : vector<64x16xf32>
    %176 = tpu.matmul %175, %14, %cst_74 {dimension_numbers = #tpu.dot_dimension_numbers<[1], [0], [0], [1], [0, 0, 1, 1], [], []>} : vector<64x16xf32>, vector<16x16xf32>, vector<64x16xf32> -> vector<64x16xf32>
    %177 = arith.addf %174, %176 : vector<64x16xf32>
    %178 = vector.extract_strided_slice %144 {offsets = [25, 0], sizes = [64, 16], strides = [1, 1]} : vector<96x16xf32> to vector<64x16xf32>
    %cst_75 = arith.constant 0.000000e+00 : f32
    %179 = vector.broadcast %cst_75 : f32 to vector<64x16xf32>
    %180 = arith.select %37, %178, %179 : vector<64x16xi1>, vector<64x16xf32>
    %cst_76 = arith.constant dense<0.000000e+00> : vector<64x16xf32>
    %181 = tpu.matmul %180, %15, %cst_76 {dimension_numbers = #tpu.dot_dimension_numbers<[1], [0], [0], [1], [0, 0, 1, 1], [], []>} : vector<64x16xf32>, vector<16x16xf32>, vector<64x16xf32> -> vector<64x16xf32>
    %182 = arith.addf %177, %181 : vector<64x16xf32>
    %183 = vector.broadcast %4 : vector<1x16xf32> to vector<64x16xf32>
    %184 = arith.addf %182, %183 : vector<64x16xf32>
    %cst_77 = arith.constant 0.000000e+00 : f32
    %185 = vector.broadcast %cst_77 : f32 to vector<64x16xf32>
    %186 = arith.maximumf %184, %185 : vector<64x16xf32>
    %cst_78 = arith.constant 0.000000e+00 : f32
    %187 = vector.broadcast %cst_78 : f32 to vector<64x16xf32>
    %188 = arith.select %39, %143, %187 : vector<64x16xi1>, vector<64x16xf32>
    %189 = arith.addf %188, %186 : vector<64x16xf32>
    %190 = vector.extract_strided_slice %137 {offsets = [64, 0], sizes = [8, 16], strides = [1, 1]} : vector<72x16xf32> to vector<8x16xf32>
    %191 = tpu.concatenate %189, %190 in 0 : vector<64x16xf32>, vector<8x16xf32> -> vector<72x16xf32>
    %192 = arith.addf %137, %191 : vector<72x16xf32>
    %cst_79 = arith.constant dense<0.000000e+00> : vector<72x32xf32>
    %193 = tpu.matmul %192, %5, %cst_79 {dimension_numbers = #tpu.dot_dimension_numbers<[1], [0], [0], [1], [0, 0, 1, 1], [], []>} : vector<72x16xf32>, vector<16x32xf32>, vector<72x32xf32> -> vector<72x32xf32>
    %194 = vector.broadcast %6 : vector<1x32xf32> to vector<72x32xf32>
    %195 = arith.addf %193, %194 : vector<72x32xf32>
    %c1_80 = arith.constant 1 : index
    %c0_81 = arith.constant 0 : index
    %c0_82 = arith.constant 0 : index
    %196 = vector.load %arg3[%c1_80, %c0_81, %c0_82] : memref<2x72x32xf32, #tpu.memory_space<vmem>>, vector<1x72x32xf32>
    %197 = vector.shape_cast %196 : vector<1x72x32xf32> to vector<72x32xf32>
    %198 = vector.shape_cast %195 : vector<72x32xf32> to vector<1x72x32xf32>
    tpu.vector_store %arg3[%c1_80, %c0_81, %c0_82], %198 {strides = array<i32>} : memref<2x72x32xf32, #tpu.memory_space<vmem>>, vector<1x72x32xf32>,
    return
  }
}

</mosaic_0001>

<bundles_post_ra>
// kernel: conv_adapter3_pallas.1
= control target key start
LH: loop header
LB: loop body
LE: loop exit
PB: predicated region body
PF: predicated region fallthrough
CT: control target
= control target key end

     0   :  { %v6449_v0 = vmov 0.0|0.0   ;;  %vm6457_vm0 = vmmov 0   ;;  %v6447_v4 = vmov 0.0   ;;  %vm6456_vm1 = vcmask 261120   ;;  %s6442_s1 = inlined_call_operand.vmem [shape: f32[216,16], index: 1, kind: input, shape index: {}]   ;;  %s6443_s0 = inlined_call_operand.vmem [shape: f32[2,72,32], index: 0, kind: input, shape index: {}]   ;;  %s6444_s2 = inlined_call_operand.vmem [shape: f32[24,32], index: 2, kind: input, shape index: {}]   ;;  %s6445_s3 = inlined_call_operand.vmem [shape: f32[2,72,32], index: 3, kind: output, shape index: {}]  }
   0x1   :  { %4749 = vmatprep.subr.bf16.mxu1 %v6449_v0  ;;  %v14_v1 = vld [vmem:[%s6442_s1] sm:$0xff]  ;;  %v15_v2 = vld [vmem:[%s6442_s1 + $0x8] sm:$0xff]  ;;  %v16_v3 = vld [vmem:[%s6442_s1 + $0x10] sm:$0xff]  ;;  %4305 = vmatprep.mubr.msk.f32.mxu1 %vm6457_vm0, %v6447_v4  ;;  %vm6480_vm2 = vcmask 130048   ;;  %vm6459_vm4 = vcmask 1040384   ;;  %vm6467_vm11 = vcmask 1046528  }
   0x2   :  { %v5051_v5 = vpack.c.bf16 %v15_v2, %v14_v1  ;;  %v17_v6 = vld [vmem:[%s6442_s1 + $0x18] sm:$0xff]  ;;  %4795 = vmatprep.subr.bf16.mxu0 %v6449_v0  ;;  %4496 = vmatprep.mubr.msk.f32.mxu0 %vm6457_vm0, %v6447_v4  ;;  %v168_v8 = vld [vmem:[%s6443_s0] sm:$0xff]  ;;  %v169_v9 = vld [vmem:[%s6443_s0 + $0x8] sm:$0xff] }
   0x3   :  { %v5060_v7 = vpack.c.bf16 %v17_v6, %v16_v3  ;;  %v170_v10 = vld [vmem:[%s6443_s0 + $0x10] sm:$0xff]  ;;  %v171_v11 = vld [vmem:[%s6443_s0 + $0x18] sm:$0xff]  ;;  %v172_v12 = vld [vmem:[%s6443_s0 + $0x20] sm:$0xff] }
   0x4   :  { %4751 = vmatpush3.bf16.msra.mxu1 %v5051_v5  ;;  %v173_v13 = vld [vmem:[%s6443_s0 + $0x28] sm:$0xff]  ;;  %v174_v14 = vld [vmem:[%s6443_s0 + $0x30] sm:$0xff]  ;;  %v175_v15 = vld [vmem:[%s6443_s0 + $0x38] sm:$0xff] }
   0x5   :  { %4752 = vmatprep.subr.bf16.mxu1 %v6449_v0  ;;  %v176_v16 = vld [vmem:[%s6443_s0 + $0x40] sm:$0xff]  ;;  %v19_v17 = vld [vmem:[%s6442_s1 + $0x28] sm:$0xff]  ;;  %v20_v18 = vld [vmem:[%s6442_s1 + $0x30] sm:$0xff] }
   0x6   :  { %v5122_v19 = vpack.c.bf16 %v20_v18, %v19_v17  ;;  %v5129_v20 = vld [vmem:[%s6442_s1 + $0x20] ss:$0 sm:$0xff] }
   0x8   :  { %4754 = vmatpush3.bf16.msra.mxu1 %v5060_v7 }
   0x9   :  { %4756 = vmatprep.subr.bf16.mxu1 %v5122_v19 }
   0xb   :  { %4306 = vmatmul.mubr.msk.f32.vlgmr.msra.gmra.mrb[0].mxu1 %vm6456_vm1, %v168_v8 }
   0xc   :  { %4308 = vmatprep.mubr.msk.f32.mxu1 %vm6457_vm0, %v6447_v4  ;;  %4758 = vmatpush3.bf16.msra.mxu1 %v5122_v19 }
   0xf   :  { %4309 = vmatmul.mubr.msk.f32.gmra.mrb[2].mxu1 %vm6456_vm1, %v169_v9 }
  0x10   :  { %4311 = vmatprep.mubr.msk.f32.mxu1 %vm6457_vm0, %v6447_v4 }
  0x13   :  { %4312 = vmatmul.mubr.msk.f32.gmra.mrb[4].mxu1 %vm6456_vm1, %v170_v10 }
  0x14   :  { %4314 = vmatprep.mubr.msk.f32.mxu1 %vm6457_vm0, %v6447_v4 }
  0x17   :  { %4315 = vmatmul.mubr.msk.f32.gmra.mrb[6].mxu1 %vm6456_vm1, %v171_v11 }
  0x18   :  { %4317 = vmatprep.mubr.msk.f32.mxu1 %vm6457_vm0, %v6447_v4 }
  0x1b   :  { %4318 = vmatmul.mubr.msk.f32.gmra.mrb[8].mxu1 %vm6456_vm1, %v172_v12 }
  0x1c   :  { %4320 = vmatprep.mubr.msk.f32.mxu1 %vm6457_vm0, %v6447_v4 }
  0x1f   :  { %4321 = vmatmul.mubr.msk.f32.gmra.mrb[10].mxu1 %vm6456_vm1, %v173_v13 }
  0x20   :  { %4323 = vmatprep.mubr.msk.f32.mxu1 %vm6457_vm0, %v6447_v4 }
  0x23   :  { %4324 = vmatmul.mubr.msk.f32.gmra.mrb[12].mxu1 %vm6456_vm1, %v174_v14 }
  0x24   :  { %4326 = vmatprep.mubr.msk.f32.mxu1 %vm6457_vm0, %v6447_v4 }
  0x27   :  { %4327 = vmatmul.mubr.msk.f32.gmra.mrb[14].mxu1 %vm6456_vm1, %v175_v15 }
  0x28   :  { %4329 = vmatprep.mubr.msk.f32.mxu1 %vm6457_vm0, %v6447_v4 }
  0x2b   :  { %4330 = vmatmul.mubr.msk.f32.gmra.mrb[16].mxu1 %vm6456_vm1, %v176_v16 }
  0xde   :  { %v275_v21 = vpop.f32.mrb[0].mxu1 }
  0xdf   :  { %v276_v22 = vadd.f32 %v5129_v20, %v275_v21  ;;  %v4307_v23 = vpop.f32.mrb[1].mxu1 }
  0xe1   :  { %v328_v24 = vmul.f32 %v276_v22, %v276_v22  ;;  %v319_v1 = vmul.f32 0.5, %v276_v22 }
  0xe2   :  { %v280_v25 = vpop.f32.mrb[2].mxu1 }
  0xe3   :  { %v337_v26 = vmul.f32 %v328_v24, %v276_v22  ;;  %v281_v27 = vadd.f32 %v5129_v20, %v280_v25  ;;  %v4310_v28 = vpop.f32.mrb[3].mxu1 }
  0xe5   :  { %v346_v29 = vmul.f32 0.044715, %v337_v26  ;;  %v329_v30 = vmul.f32 %v281_v27, %v281_v27  ;;  %v320_v16 = vmul.f32 0.5, %v281_v27 }
  0xe6   :  { %v285_v31 = vpop.f32.mrb[4].mxu1 }
  0xe7   :  { %v355_v32 = vadd.f32 %v346_v29, %v276_v22  ;;  %v338_v33 = vmul.f32 %v329_v30, %v281_v27  ;;  %v286_v34 = vadd.f32 %v5129_v20, %v285_v31  ;;  %v4313_v35 = vpop.f32.mrb[5].mxu1 }
  0xe9   :  { %v364_v36 = vmul.f32 0.7978846, %v355_v32  ;;  %v347_v37 = vmul.f32 0.044715, %v338_v33  ;;  %v330_v38 = vmul.f32 %v286_v34, %v286_v34  ;;  %v321_v31 = vmul.f32 0.5, %v286_v34 }
  0xea   :  { %v290_v39 = vpop.f32.mrb[6].mxu1 }
  0xeb   :  { %4978 = vtanh.f32 %v364_v36  ;;  %v356_v40 = vadd.f32 %v347_v37, %v281_v27  ;;  %v339_v41 = vmul.f32 %v330_v38, %v286_v34  ;;  %v291_v42 = vadd.f32 %v5129_v20, %v290_v39  ;;  %v4316_v43 = vpop.f32.mrb[7].mxu1 }
  0xed   :  { %v365_v44 = vmul.f32 0.7978846, %v356_v40  ;;  %v348_v45 = vmul.f32 0.044715, %v339_v41  ;;  %v331_v46 = vmul.f32 %v291_v42, %v291_v42  ;;  %v322_v39 = vmul.f32 0.5, %v291_v42 }
  0xee   :  { %v295_v47 = vpop.f32.mrb[8].mxu1 }
  0xef   :  { %4980 = vtanh.f32 %v365_v44  ;;  %v357_v48 = vadd.f32 %v348_v45, %v286_v34  ;;  %v340_v49 = vmul.f32 %v331_v46, %v291_v42  ;;  %v296_v50 = vadd.f32 %v5129_v20, %v295_v47  ;;  %v4319_v51 = vpop.f32.mrb[9].mxu1 }
  0xf1   :  { %v366_v52 = vmul.f32 0.7978846, %v357_v48  ;;  %v349_v53 = vmul.f32 0.044715, %v340_v49  ;;  %v332_v54 = vmul.f32 %v296_v50, %v296_v50  ;;  %v323_v45 = vmul.f32 0.5, %v296_v50 }
  0xf2   :  { %v300_v55 = vpop.f32.mrb[10].mxu1 }
  0xf3   :  { %4982 = vtanh.f32 %v366_v52  ;;  %v358_v56 = vadd.f32 %v349_v53, %v291_v42  ;;  %v341_v57 = vmul.f32 %v332_v54, %v296_v50  ;;  %v301_v58 = vadd.f32 %v5129_v20, %v300_v55  ;;  %v4322_v59 = vpop.f32.mrb[11].mxu1 }
  0xf5   :  { %v4979_v60 = vpop.eup %4978  ;;  %v367_v61 = vmul.f32 0.7978846, %v358_v56  ;;  %v350_v62 = vmul.f32 0.044715, %v341_v57  ;;  %v333_v63 = vmul.f32 %v301_v58, %v301_v58  ;;  %v324_v42 = vmul.f32 0.5, %v301_v58 }
  0xf6   :  { %v305_v2 = vpop.f32.mrb[12].mxu1  ;;  %v382_v3 = vadd.f32 1.0, %v4979_v60 }
  0xf7   :  { %4984 = vtanh.f32 %v367_v61  ;;  %v359_v6 = vadd.f32 %v350_v62, %v296_v50  ;;  %v342_v8 = vmul.f32 %v333_v63, %v301_v58  ;;  %v306_v9 = vadd.f32 %v5129_v20, %v305_v2  ;;  %v4325_v10 = vpop.f32.mrb[13].mxu1  ;;  %v28_v61 = vld [vmem:[%s6442_s1 + $0x50] sm:$0xff]  ;;  %v29_v62 = vld [vmem:[%s6442_s1 + $0x58] sm:$0xff]  ;;  %v27_v2 = vld [vmem:[%s6442_s1 + $0x48] sm:$0xff] }
  0xf8   :  { %v5138_v11 = vmul.f32 %v382_v3, %v319_v1  ;;  %v5180_v63 = vpack.c.bf16 %v29_v62, %v28_v61  ;;  %v26_v1 = vld [vmem:[%s6442_s1 + $0x40] sm:$0xff]  ;;  %v33_v61 = vld [vmem:[%s6442_s1 + $0x78] sm:$0xff] }
  0xf9   :  { %v4981_v12 = vpop.eup %4980  ;;  %v368_v13 = vmul.f32 0.7978846, %v359_v6  ;;  %v351_v14 = vmul.f32 0.044715, %v342_v8  ;;  %v334_v15 = vmul.f32 %v306_v9, %v306_v9  ;;  %v325_v53 = vmul.f32 0.5, %v306_v9 }
  0xfa   :  { %v383_v17 = vadd.f32 1.0, %v4981_v12  ;;  %v310_v18 = vpop.f32.mrb[14].mxu1  ;;  %4336 = vmatprep.mubr.msk.f32.mxu1 %vm6480_vm2, %v5138_v11  ;;  %4760 = vmatprep.subr.bf16.mxu1 %v5180_v63  ;;  %v5190_v3 = vpack.c.bf16 %v27_v2, %v26_v1  ;;  %v5196_v6 = vld [vmem:[%s6442_s1 + $0x38] ss:$0 sm:$0xff]  ;;  %v30_v12 = vld [vmem:[%s6442_s1 + $0x60] sm:$0xff] }
  0xfb   :  { %4986 = vtanh.f32 %v368_v13  ;;  %v360_v21 = vadd.f32 %v351_v14, %v301_v58  ;;  %v343_v22 = vmul.f32 %v334_v15, %v306_v9  ;;  %v311_v23 = vadd.f32 %v5129_v20, %v310_v18  ;;  %v4328_v24 = vpop.f32.mrb[15].mxu1  ;;  %v31_v13 = vld [vmem:[%s6442_s1 + $0x68] sm:$0xff] }
  0xfc   :  { %v5143_v25 = vmul.f32 %v383_v17, %v320_v16  ;;  %v5208_v16 = vpack.c.bf16 %v31_v13, %v30_v12 }
  0xfd   :  { %v4983_v26 = vpop.eup %4982  ;;  %v369_v28 = vmul.f32 0.7978846, %v360_v21  ;;  %v352_v29 = vmul.f32 0.044715, %v343_v22  ;;  %v335_v30 = vmul.f32 %v311_v23, %v311_v23  ;;  %v326_v56 = vmul.f32 0.5, %v311_v23 }
  0xfe   :  { %4337 = vmatmul.mubr.msk.f32.vlgmr.msra.gmra.mrb[18].mxu1 %vm6480_vm2, %v5143_v25  ;;  %v384_v27 = vadd.f32 1.0, %v4983_v26  ;;  %v5172_v59 = vpop.f32.mrb[16].mxu1 }
  0xff   :  { %4988 = vtanh.f32 %v369_v28  ;;  %v361_v32 = vadd.f32 %v352_v29, %v306_v9  ;;  %v344_v33 = vmul.f32 %v335_v30, %v311_v23  ;;  %v4331_v60 = vpop.f32.mrb[17].mxu1  ;;  %4762 = vmatpush3.bf16.msra.mxu1 %v5180_v63  ;;  %v6446_v28 = vlaneseq }
 0x100   :  { %v5147_v35 = vmul.f32 %v384_v27, %v321_v31  ;;  %4764 = vmatprep.subr.bf16.mxu1 %v5190_v3  ;;  %v32_v60 = vld [vmem:[%s6442_s1 + $0x70] sm:$0xff] }
 0x101   :  { %v4985_v36 = vpop.eup %4984  ;;  %v370_v37 = vmul.f32 0.7978846, %v361_v32  ;;  %v353_v38 = vmul.f32 0.044715, %v344_v33  ;;  %v5231_v32 = vshrl.u32 %v6446_v28, 7 }
 0x102   :  { %4339 = vmatprep.mubr.msk.f32.mxu1 %vm6480_vm2, %v5147_v35  ;;  %v385_v40 = vadd.f32 1.0, %v4985_v36 }
 0x103   :  { %4990 = vtanh.f32 %v370_v37  ;;  %v362_v41 = vadd.f32 %v353_v38, %v311_v23  ;;  %v5240_v37 = vadd.s32 8, %v5231_v32  ;;  %v5243_v38 = vadd.s32 16, %v5231_v32 }
 0x104   :  { %v5151_v34 = vmul.f32 %v385_v40, %v322_v39  ;;  %v59_v39 = vand.u32 7, %v5231_v32  ;;  %v5312_v13 = vadd.s32 48, %v5231_v32 }
 0x105   :  { %v4987_v43 = vpop.eup %4986  ;;  %v371_v44 = vmul.f32 0.7978846, %v362_v41 }
 0x106   :  { %4340 = vmatmul.mubr.msk.f32.gmra.mrb[20].mxu1 %vm6480_vm2, %v5151_v34  ;;  %v386_v46 = vadd.f32 1.0, %v4987_v43  ;;  %v5251_v43 = vrot.slane %v6447_v4, 7  ;;  %vm5262_vm3 = vcmp.ge.s32.totalorder %v59_v39, 1  ;;  %vm5401_vm13 = vcmp.le.s32.totalorder %v59_v39, 6  ;;  %v35_v39 = vld [vmem:[%s6442_s1 + $0x88] sm:$0xff] }
 0x107   :  { %4992 = vtanh.f32 %v371_v44  ;;  %v5254_v44 = vadd.s32 24, %v5231_v32 }
 0x108   :  { %v5155_v47 = vmul.f32 %v386_v46, %v323_v45 }
 0x109   :  { %v4989_v48 = vpop.eup %4988 }
 0x10a   :  { %4342 = vmatprep.mubr.msk.f32.mxu1 %vm6480_vm2, %v5155_v47  ;;  %v387_v49 = vadd.f32 1.0, %v4989_v48  ;;  %v66_v48 = vand.u32 7, %v5240_v37 }
 0x10c   :  { %v5159_v51 = vmul.f32 %v387_v49, %v324_v42  ;;  %v73_v42 = vand.u32 7, %v5243_v38  ;;  %v6498_v49 = vmov 0  ;;  %vm5289_vm5 = vcmp.ge.s32.totalorder %v66_v48, 1 }
 0x10d   :  { %v4991_v52 = vpop.eup %4990  ;;  %v6499_v49 = vsel %vm5262_vm3, 4294967295, %v6498_v49  ;;  %vm5411_vm14 = vcmp.le.s32.totalorder %v66_v48, 6 }
 0x10e   :  { %4343 = vmatmul.mubr.msk.f32.gmra.mrb[22].mxu1 %vm6480_vm2, %v5159_v51  ;;  %v388_v50 = vadd.f32 1.0, %v4991_v52  ;;  %vm5299_vm6 = vcmp.ge.s32.totalorder %v73_v42, 1  ;;  %vm5433_vm15 = vcmp.le.s32.totalorder %v73_v42, 6 }
 0x110   :  { %v5163_v54 = vmul.f32 %v388_v50, %v325_v53  ;;  %v5268_v53 = vadd.s32 32, %v5231_v32 }
 0x111   :  { %v4993_v55 = vpop.eup %4992 }
 0x112   :  { %4345 = vmatprep.mubr.msk.f32.mxu1 %vm6480_vm2, %v5163_v54  ;;  %v389_v57 = vadd.f32 1.0, %v4993_v55  ;;  %v5275_v55 = vsel %vm5262_vm3, %v5251_v43, 0.0 }
 0x113   :  { %6500 = vst [vmem:[#allocation2_spill] sm:$0xff] %v5275_v55 }
 0x114   :  { %v5167_v58 = vmul.f32 %v389_v57, %v326_v56  ;;  %v6454_v56 = vand.u32 7, %v5254_v44  ;;  %v5279_v57 = vadd.s32 40, %v5231_v32 }
 0x116   :  { %4346 = vmatmul.mubr.msk.f32.gmra.mrb[24].mxu1 %vm6480_vm2, %v5167_v58  ;;  %vm5321_vm7 = vcmp.ge.s32.totalorder %v6454_v56, 1 }
 0x117   :  { %4352 = vmatprep.mubr.f32.mxu1 %v6447_v4 }
 0x1d1   :  { %v4338_v8 = vpop.f32.mrb[18].mxu1 }
 0x1d2   :  { %v501_v9 = vadd.f32 %v4338_v8, %v5196_v6  ;;  %v495_v10 = vpop.f32.mrb[19].mxu1 }
 0x1d3   :  { %v496_v14 = vadd.f32 %v5196_v6, %v495_v10  ;;  %v6453_v10 = vand.u32 7, %v5268_v53 }
 0x1d4   :  { %v5210_v17 = vmax.f32 %v501_v9, 0.0 }
 0x1d5   :  { %v5206_v15 = vmax.f32 %v496_v14, 0.0  ;;  %v5314_v14 = vpack.c.bf16 %v33_v61, %v32_v60  ;;  %vm5341_vm8 = vcmp.ge.s32.totalorder %v6453_v10, 1 }
 0x1d6   :  { %v555_v52 = vrot.slane %v5210_v17, 7 }
 0x1d7   :  { %4353 = vmatmul.mubr.msk.f32.vlgmr.msra.gmra.mrb[26].mxu1 %vm6480_vm2, %v5206_v15  ;;  %v553_v45 = vrot.slane %v5206_v15, 7  ;;  %6505 = vst [vmem:[#allocation3_spill] sm:$0xff] %v5314_v14  ;;  %v836_v28 = vrot.slane %v5206_v15, 1 }
 0x1d8   :  { %4355 = vmatprep.mubr.msk.f32.mxu1 %vm6480_vm2, %v5210_v17  ;;  %4766 = vmatpush3.bf16.msra.mxu1 %v5190_v3 }
 0x1d9   :  { %v4341_v18 = vpop.f32.mrb[20].mxu1  ;;  %4768 = vmatprep.subr.bf16.mxu1 %v5208_v16  ;;  %v5295_v1 = vsel %vm6459_vm4, %v5251_v43, %v553_v45  ;;  %v5307_v9 = vsel %vm6459_vm4, %v553_v45, %v555_v52 }
 0x1da   :  { %v511_v21 = vadd.f32 %v4341_v18, %v5196_v6  ;;  %v505_v22 = vpop.f32.mrb[21].mxu1  ;;  %v576_v18 = vsel %vm5289_vm5, %v5295_v1, 0.0 }
 0x1db   :  { %v506_v23 = vadd.f32 %v5196_v6, %v505_v22  ;;  %v6451_v22 = vand.u32 7, %v5279_v57 }
 0x1dc   :  { %v5222_v26 = vmax.f32 %v511_v21, 0.0 }
 0x1dd   :  { %v5220_v24 = vmax.f32 %v506_v23, 0.0  ;;  %v577_v23 = vsel %vm5299_vm6, %v5307_v9, 0.0  ;;  %vm5356_vm9 = vcmp.ge.s32.totalorder %v6451_v22, 1 }
 0x1de   :  { %v559_v12 = vrot.slane %v5222_v26, 7  ;;  %v842_v56 = vrot.slane %v5222_v26, 1 }
 0x1df   :  { %4356 = vmatmul.mubr.msk.f32.gmra.mrb[28].mxu1 %vm6480_vm2, %v5220_v24  ;;  %v557_v8 = vrot.slane %v5220_v24, 7  ;;  %v840_v22 = vrot.slane %v5220_v24, 1 }
 0x1e0   :  { %4358 = vmatprep.mubr.msk.f32.mxu1 %vm6480_vm2, %v5222_v26 }
 0x1e1   :  { %v4344_v29 = vpop.f32.mrb[22].mxu1  ;;  %v5346_v37 = vsel %vm6459_vm4, %v557_v8, %v559_v12  ;;  %v5459_v42 = vsel %vm6467_vm11, %v840_v22, %v842_v56 }
 0x1e2   :  { %v521_v30 = vadd.f32 %v4344_v29, %v5196_v6  ;;  %v515_v31 = vpop.f32.mrb[23].mxu1  ;;  %v5331_v29 = vsel %vm6459_vm4, %v555_v52, %v557_v8  ;;  %v579_v60 = vsel %vm5341_vm8, %v5346_v37, 0.0 }
 0x1e3   :  { %v516_v27 = vadd.f32 %v5196_v6, %v515_v31  ;;  %v5335_v31 = vadd.s32 56, %v5231_v32  ;;  %v34_v32 = vld [vmem:[%s6442_s1 + $0x80] sm:$0xff] }
 0x1e4   :  { %v5235_v36 = vmax.f32 %v521_v30, 0.0 }
 0x1e5   :  { %v5233_v33 = vmax.f32 %v516_v27, 0.0  ;;  %v6508_v27 = vmov 0  ;;  %v108_v8 = vand.u32 7, %v5335_v31 }
 0x1e6   :  { %v6509_v27 = vsel %vm5341_vm8, 4294967295, %v6508_v27  ;;  %v563_v45 = vrot.slane %v5235_v36, 7 }
 0x1e7   :  { %4359 = vmatmul.mubr.msk.f32.gmra.mrb[30].mxu1 %vm6480_vm2, %v5233_v33  ;;  %v561_v30 = vrot.slane %v5233_v33, 7  ;;  %vm5388_vm12 = vcmp.ge.s32.totalorder %v108_v8, 1 }
 0x1e8   :  { %4361 = vmatprep.mubr.msk.f32.mxu1 %vm6480_vm2, %v5235_v36 }
 0x1e9   :  { %v5248_v40 = vpop.f32.mrb[24].mxu1  ;;  %v5365_v61 = vsel %vm6459_vm4, %v559_v12, %v561_v30 }
 0x1ea   :  { %v525_v41 = vpop.f32.mrb[25].mxu1  ;;  %v580_v12 = vsel %vm5356_vm9, %v5365_v61, 0.0 }
 0x1eb   :  { %v526_v46 = vadd.f32 %v5196_v6, %v525_v41  ;;  %v101_v41 = vand.u32 7, %v5312_v13 }
 0x1ed   :  { %v5270_v50 = vmax.f32 %v526_v46, 0.0  ;;  %v578_v46 = vsel %vm5321_vm7, %v5331_v29, 0.0  ;;  %vm5370_vm10 = vcmp.ge.s32.totalorder %v101_v41, 1 }
 0x1ef   :  { %4362 = vmatmul.mubr.msk.f32.gmra.mrb[32].mxu1 %vm6480_vm2, %v5270_v50  ;;  %v6452_v13 = vrot.slane %v5270_v50, 7 }
 0x1f0   :  { %4368 = vmatprep.mubr.msk.f32.mxu1 %vm6480_vm2, %v5275_v55  ;;  %v6520_v55 = vmov 0 }
 0x1f1   :  { %v6521_v55 = vsel %vm5433_vm15, 4294967295, %v6520_v55 }
 0x1f3   :  { %4369 = vmatmul.mubr.msk.f32.vlgmr.msra.gmra.mrb[26].mxu1 %vm6480_vm2, %v576_v18  ;;  %v6512_v18 = vmov 0 }
 0x1f4   :  { %4770 = vmatpush3.bf16.msra.mxu1 %v5208_v16  ;;  %4371 = vmatprep.mubr.msk.f32.mxu1 %vm6480_vm2, %v577_v23  ;;  %v6513_v18 = vsel %vm5370_vm10, 4294967295, %v6512_v18  ;;  %v5375_v23 = vsel %vm6459_vm4, %v561_v30, %v563_v45  ;;  %v5395_v30 = vsel %vm6459_vm4, %v563_v45, %v6452_v13  ;;  %v6518_v13 = vmov 0 }
 0x1f5   :  { %4772 = vmatprep.subr.bf16.mxu1 %v5314_v14  ;;  %v581_v31 = vsel %vm5370_vm10, %v5375_v23, 0.0  ;;  %v582_v45 = vsel %vm5388_vm12, %v5395_v30, 0.0  ;;  %v6519_v13 = vsel %vm5411_vm14, 4294967295, %v6518_v13 }
 0x1f7   :  { %4372 = vmatmul.mubr.msk.f32.gmra.mrb[28].mxu1 %vm6480_vm2, %v578_v46  ;;  %v5378_v46 = vrot.slane %v6447_v4, 1  ;;  %v838_v4 = vrot.slane %v5210_v17, 1 }
 0x1f8   :  { %4374 = vmatprep.mubr.msk.f32.mxu1 %vm6480_vm2, %v579_v60 }
 0x1f9   :  { %v837_v0 = vsel %vm6467_vm11, %v5378_v46, %v836_v28  ;;  %v5427_v48 = vsel %vm6467_vm11, %v836_v28, %v838_v4  ;;  %v6523_v28 = vand.u32 7, %v5254_v44  ;;  %v6526_v44 = vand.u32 7, %v5268_v53 }
 0x1fa   :  { %v860_v10 = vsel %vm5401_vm13, %v837_v0, 0.0  ;;  %v861_v0 = vsel %vm5411_vm14, %v5427_v48, 0.0 }
 0x1fb   :  { %4375 = vmatmul.mubr.msk.f32.gmra.mrb[30].mxu1 %vm6480_vm2, %v580_v12  ;;  %vm5448_vm1 = vcmp.le.s32.totalorder %v6523_v28, 6  ;;  %vm5466_vm0 = vcmp.le.s32.totalorder %v6526_v44, 6  ;;  %v6529_v28 = vand.u32 7, %v5279_v57 }
 0x1fc   :  { %4377 = vmatprep.mubr.msk.f32.mxu1 %vm6480_vm2, %v581_v31  ;;  %v531_v31 = vadd.f32 %v5248_v40, %v5196_v6  ;;  %v5438_v6 = vsel %vm6467_vm11, %v838_v4, %v840_v22  ;;  %v844_v40 = vrot.slane %v5233_v33, 1  ;;  %v863_v22 = vsel %vm5448_vm1, %v5459_v42, 0.0 }
 0x1fd   :  { %v862_v4 = vsel %vm5433_vm15, %v5438_v6, 0.0  ;;  %vm5484_vm4 = vcmp.le.s32.totalorder %v6529_v28, 6  ;;  %v6534_v28 = vmov 0 }
 0x1fe   :  { %v5452_v38 = vmax.f32 %v531_v31, 0.0  ;;  %v5471_v31 = vsel %vm6467_vm11, %v842_v56, %v844_v40 }
 0x1ff   :  { %4378 = vmatmul.mubr.msk.f32.gmra.mrb[32].mxu1 %vm6480_vm2, %v582_v45  ;;  %v5441_v45 = vpack.c.bf16 %v35_v39, %v34_v32  ;;  %v846_v32 = vrot.slane %v5235_v36, 1  ;;  %v6527_v39 = vmov 0  ;;  %v864_v53 = vsel %vm5466_vm0, %v5471_v31, 0.0 }
 0x200   :  { %4384 = vmatprep.mubr.msk.f32.mxu1 %vm6480_vm2, %v860_v10  ;;  %v6524_v10 = vmov 0  ;;  %v6528_v39 = vsel %vm5466_vm0, 4294967295, %v6527_v39  ;;  %v6466_v44 = vrot.slane %v5452_v38, 1  ;;  %vm5507_vm0 = vcmp.le.s32.totalorder %v108_v8, 6  ;;  %v37_v8 = vld [vmem:[%s6442_s1 + $0x98] sm:$0xff] }
 0x201   :  { %6522 = vst [vmem:[#allocation4_spill] sm:$0xff] %v5441_v45  ;;  %v6525_v10 = vsel %vm5448_vm1, 4294967295, %v6524_v10  ;;  %v5489_v56 = vsel %vm6467_vm11, %v844_v40, %v846_v32  ;;  %vm5493_vm1 = vcmp.le.s32.totalorder %v101_v41, 6  ;;  %v6535_v28 = vsel %vm5507_vm0, 4294967295, %v6534_v28 }
 0x202   :  { %v865_v57 = vsel %vm5484_vm4, %v5489_v56, 0.0 }
 0x203   :  { %4385 = vmatmul.mubr.msk.f32.vlgmr.msra.gmra.mrb[26].mxu1 %vm6480_vm2, %v861_v0  ;;  %v848_v0 = vrot.slane %v5270_v50, 1 }
 0x204   :  { %4774 = vmatpush3.bf16.msra.mxu1 %v5314_v14  ;;  %4387 = vmatprep.mubr.msk.f32.mxu1 %vm6480_vm2, %v862_v4  ;;  %v6530_v4 = vmov 0  ;;  %v6532_v14 = vmov 0 }
 0x205   :  { %4776 = vmatprep.subr.bf16.mxu1 %v5441_v45  ;;  %v6531_v4 = vsel %vm5484_vm4, 4294967295, %v6530_v4  ;;  %v6533_v14 = vsel %vm5493_vm1, 4294967295, %v6532_v14  ;;  %v5514_v41 = vsel %vm6467_vm11, %v848_v0, %v6466_v44  ;;  %v1010_v44 = vsel %vm5299_vm6, %v5331_v29, 0.0 }
 0x207   :  { %4388 = vmatmul.mubr.msk.f32.gmra.mrb[28].mxu1 %vm6480_vm2, %v863_v22  ;;  %v5498_v22 = vsel %vm6467_vm11, %v846_v32, %v848_v0  ;;  %v867_v32 = vsel %vm5507_vm0, %v5514_v41, 0.0  ;;  %v1008_v0 = vsel %vm5262_vm3, %v5295_v1, 0.0  ;;  %v1011_v1 = vsel %vm5321_vm7, %v5346_v37, 0.0 }
 0x208   :  { %4390 = vmatprep.mubr.msk.f32.mxu1 %vm6480_vm2, %v864_v53  ;;  %v866_v40 = vsel %vm5493_vm1, %v5498_v22, 0.0  ;;  %v36_v53 = vld [vmem:[%s6442_s1 + $0x90] sm:$0xff]  ;;  %vm6538_vm11 = vcmask 1040384  }
 0x20b   :  { %4391 = vmatmul.mubr.msk.f32.gmra.mrb[30].mxu1 %vm6480_vm2, %v865_v57  ;;  %v5531_v57 = vpack.c.bf16 %v37_v8, %v36_v53  ;;  %v6470_v53 = vrot.slane %v5452_v38, 7  ;;  %v1014_v8 = vsel %vm5370_vm10, %v5395_v30, 0.0 }
 0x20c   :  { %4393 = vmatprep.mubr.msk.f32.mxu1 %vm6480_vm2, %v866_v40  ;;  %v1009_v40 = vsel %vm5289_vm5, %v5307_v9, 0.0 }
 0x20d   :  { %6536 = vst [vmem:[#allocation5_spill] sm:$0xff] %v5531_v57 }
 0x20f   :  { %4394 = vmatmul.mubr.msk.f32.gmra.mrb[32].mxu1 %vm6480_vm2, %v867_v32  ;;  %v1012_v32 = vsel %vm5341_vm8, %v5365_v61, 0.0 }
 0x210   :  { %4400 = vmatprep.mubr.msk.f32.mxu1 %vm6480_vm2, %v1008_v0  ;;  %v6537_v0 = vrot.slane %v5270_v50, 7 }
 0x213   :  { %4401 = vmatmul.mubr.msk.f32.vlgmr.msra.gmra.mrb[26].mxu1 %vm6480_vm2, %v1009_v40  ;;  %v1006_v40 = vsel %vm6538_vm11, %v6537_v0, %v6470_v53  ;;  %v41_v0 = vld [vmem:[%s6442_s1 + $0xb8] sm:$0xff]  ;;  %v1272_v53 = vsel %vm5433_vm15, %v5459_v42, 0.0  ;;  %vm6540_vm11 = vnez %v6525_v10 }
 0x214   :  { %4778 = vmatpush3.bf16.msra.mxu1 %v5441_v45  ;;  %4403 = vmatprep.mubr.msk.f32.mxu1 %vm6480_vm2, %v1010_v44  ;;  %v1013_v44 = vsel %vm5356_vm9, %v5375_v23, 0.0 }
 0x215   :  { %4780 = vmatprep.subr.bf16.mxu1 %v5531_v57 }
 0x217   :  { %4404 = vmatmul.mubr.msk.f32.gmra.mrb[28].mxu1 %vm6480_vm2, %v1011_v1  ;;  %v1015_v1 = vsel %vm5388_vm12, %v1006_v40, 0.0 }
 0x218   :  { %4406 = vmatprep.mubr.msk.f32.mxu1 %vm6480_vm2, %v1012_v32  ;;  %v38_v32 = vld [vmem:[%s6442_s1 + $0xa0] sm:$0xff] }
 0x21b   :  { %4407 = vmatmul.mubr.msk.f32.gmra.mrb[30].mxu1 %vm6480_vm2, %v1013_v44  ;;  %v39_v44 = vld [vmem:[%s6442_s1 + $0xa8] sm:$0xff] }
 0x21c   :  { %4409 = vmatprep.mubr.msk.f32.mxu1 %vm6480_vm2, %v1014_v8  ;;  %v5576_v45 = vpack.c.bf16 %v39_v44, %v38_v32  ;;  %v40_v8 = vld [vmem:[%s6442_s1 + $0xb0] sm:$0xff]  ;;  %v1271_v44 = vsel %vm5411_vm14, %v5438_v6, 0.0  ;;  %vm6541_vm14 = vnez %v6528_v39 }
 0x21d   :  { %v5604_v32 = vpack.c.bf16 %v41_v0, %v40_v8  ;;  %v1274_v8 = vsel %vm6541_vm14, %v5489_v56, 0.0  ;;  %v1275_v0 = vsel %vm5484_vm4, %v5498_v22, 0.0 }
 0x21e   :  { %6539 = vst [vmem:[#allocation6_spill] sm:$0xff] %v5576_v45 }
 0x21f   :  { %4410 = vmatmul.mubr.msk.f32.gmra.mrb[32].mxu1 %vm6480_vm2, %v1015_v1  ;;  %v1270_v1 = vsel %vm5401_vm13, %v5427_v48, 0.0  ;;  %v1273_v48 = vsel %vm6540_vm11, %v5471_v31, 0.0  ;;  %vm6543_vm11 = vcmask 1046528  }
 0x220   :  { %4416 = vmatprep.mubr.msk.f32.mxu1 %vm6480_vm2, %v5206_v15 }
 0x223   :  { %4417 = vmatmul.mubr.msk.f32.vlgmr.msra.gmra.mrb[26].mxu1 %vm6480_vm2, %v5210_v17 }
 0x224   :  { %4782 = vmatpush3.bf16.msra.mxu1 %v5531_v57  ;;  %4419 = vmatprep.mubr.msk.f32.mxu1 %vm6480_vm2, %v5220_v24  ;;  %v1419_v57 = vsel %vm5299_vm6, %v5346_v37, 0.0  ;;  %v1422_v37 = vsel %vm5356_vm9, %v5395_v30, 0.0  ;;  %v6546_v30 = vmov 0.0|0.0  }
 0x225   :  { %4784 = vmatprep.subr.bf16.mxu1 %v5576_v45 }
 0x227   :  { %4420 = vmatmul.mubr.msk.f32.gmra.mrb[28].mxu1 %vm6480_vm2, %v5222_v26 }
 0x228   :  { %4422 = vmatprep.mubr.msk.f32.mxu1 %vm6480_vm2, %v5233_v33 }
 0x22b   :  { %4423 = vmatmul.mubr.msk.f32.gmra.mrb[30].mxu1 %vm6480_vm2, %v5235_v36 }
 0x22c   :  { %4425 = vmatprep.mubr.msk.f32.mxu1 %vm6480_vm2, %v5270_v50 }
 0x22f   :  { %4426 = vmatmul.mubr.msk.f32.gmra.mrb[32].mxu1 %vm6480_vm2, %v5452_v38 }
 0x230   :  { %4432 = vmatprep.mubr.msk.f32.mxu1 %vm6480_vm2, %v1270_v1  ;;  %v6542_v1 = vrot.slane %v5452_v38, 1 }
 0x233   :  { %4433 = vmatmul.mubr.msk.f32.vlgmr.msra.gmra.mrb[26].mxu1 %vm6480_vm2, %v1271_v44  ;;  %v1268_v44 = vsel %vm6543_vm11, %v6542_v1, %v5378_v46  ;;  %v1418_v1 = vsel %vm5289_vm5, %v5331_v29, 0.0  ;;  %v1421_v29 = vsel %vm5341_vm8, %v5375_v23, 0.0  ;;  %vm6545_vm11 = vcmask 1040384  }
 0x234   :  { %4786 = vmatpush3.bf16.msra.mxu1 %v5576_v45  ;;  %4435 = vmatprep.mubr.msk.f32.mxu1 %vm6480_vm2, %v1272_v53  ;;  %v1276_v53 = vsel %vm5493_vm1, %v5514_v41, 0.0  ;;  %v1417_v45 = vsel %vm5262_vm3, %v5307_v9, 0.0  ;;  %v1420_v9 = vsel %vm5321_vm7, %v5365_v61, 0.0  ;;  %v6544_v61 = vrot.slane %v5452_v38, 7 }
 0x235   :  { %4788 = vmatprep.subr.bf16.mxu1 %v5604_v32  ;;  %vm6549_vm3 = vnez %v6525_v10 }
 0x237   :  { %4436 = vmatmul.mubr.msk.f32.gmra.mrb[28].mxu1 %vm6480_vm2, %v1273_v48  ;;  %v1277_v48 = vsel %vm5507_vm0, %v1268_v44, 0.0 }
 0x238   :  { %4438 = vmatprep.mubr.msk.f32.mxu1 %vm6480_vm2, %v1274_v8  ;;  %v42_v8 = vld [vmem:[%s6442_s1 + $0xc0] sm:$0xff] }
 0x23b   :  { %4439 = vmatmul.mubr.msk.f32.gmra.mrb[30].mxu1 %vm6480_vm2, %v1275_v0  ;;  %v43_v0 = vld [vmem:[%s6442_s1 + $0xc8] sm:$0xff] }
 0x23c   :  { %4441 = vmatprep.mubr.msk.f32.mxu1 %vm6480_vm2, %v1276_v53  ;;  %v5649_v53 = vpack.c.bf16 %v43_v0, %v42_v8  ;;  %v1679_v0 = vsel %vm5433_vm15, %v5471_v31, 0.0  ;;  %v1683_v31 = vsel %vm5493_vm1, %v1268_v44, 0.0 }
 0x23f   :  { %4442 = vmatmul.mubr.msk.f32.gmra.mrb[32].mxu1 %vm6480_vm2, %v1277_v48  ;;  %v1677_v48 = vsel %vm5401_vm13, %v5438_v6, 0.0  ;;  %v1681_v6 = vsel %vm6541_vm14, %v5498_v22, 0.0  ;;  %vm6550_vm14 = vmmov 0   ;;  %v23_v22 = vld [vmem:[%s6444_s2] sm:$0xff] }
 0x240   :  { %4448 = vmatprep.mubr.msk.f32.mxu1 %vm6480_vm2, %v1417_v45  ;;  %v1423_v45 = vsel %vm5370_vm10, %v1006_v40, 0.0  ;;  %v6547_v40 = vmov 0.0  }
 0x243   :  { %4449 = vmatmul.mubr.msk.f32.vlgmr.msra.gmra.mrb[26].mxu1 %vm6480_vm2, %v1418_v1  ;;  %v1680_v1 = vsel %vm6549_vm3, %v5489_v56, 0.0  ;;  %v5730_v56 = vsel %vm5507_vm0, %v5378_v46, 0.0  ;;  %vm6552_vm0 = vcmask 130048  }
 0x244   :  { %4790 = vmatpush3.bf16.msra.mxu1 %v5604_v32  ;;  %4451 = vmatprep.mubr.msk.f32.mxu1 %vm6480_vm2, %v1419_v57  ;;  %v1415_v57 = vsel %vm6545_vm11, %v6544_v61, %v5251_v43  ;;  %vm6548_vm11 = vnez %v6519_v13  ;;  %vm6553_vm1 = vmmov %vm6552_vm0 }
 0x245   :  { %4792 = vmatprep.subr.bf16.mxu1 %v5649_v53  ;;  %v1424_v23 = vsel %vm5388_vm12, %v1415_v57, 0.0  ;;  %v1678_v8 = vsel %vm6548_vm11, %v5459_v42, 0.0  ;;  %v1682_v42 = vsel %vm5484_vm4, %v5514_v41, 0.0  ;;  %v24_v41 = vld [vmem:[%s6444_s2 + $0x8] sm:$0xff] }
 0x246   :  { %v4796_v44 = vpack.c.bf16 %v24_v41, %v23_v22 }
 0x247   :  { %4452 = vmatmul.mubr.msk.f32.gmra.mrb[28].mxu1 %vm6480_vm2, %v1420_v9  ;;  %v5745_v9 = vadd.f32 %v5129_v20, %v5172_v59 }
 0x248   :  { %4454 = vmatprep.mubr.msk.f32.mxu1 %vm6480_vm2, %v1421_v29  ;;  %4797 = vmatpush3.bf16.msra.mxu0 %v4796_v44  ;;  %v6551_v29 = vlaneseq }
 0x249   :  { %4798 = vmatprep.subr.bf16.mxu0 %v6546_v30  ;;  %v336_v61 = vmul.f32 %v5745_v9, %v5745_v9 }
 0x24b   :  { %4455 = vmatmul.mubr.msk.f32.gmra.mrb[30].mxu1 %vm6480_vm2, %v1422_v37  ;;  %v5748_v37 = vand.u32 127, %v6551_v29  ;;  %v345_v59 = vmul.f32 %v336_v61, %v5745_v9 }
 0x24c   :  { %4457 = vmatprep.mubr.msk.f32.mxu1 %vm6480_vm2, %v1423_v45  ;;  %v5753_v45 = vld [vmem:[%s6442_s1 + $0xd0] ss:$0 sm:$0xff] }
 0x24d   :  { %v354_v41 = vmul.f32 0.044715, %v345_v59 }
 0x24f   :  { %4458 = vmatmul.mubr.msk.f32.gmra.mrb[32].mxu1 %vm6480_vm2, %v1424_v23 }
 0x250   :  { %4464 = vmatprep.mubr.msk.f32.mxu1 %vm6480_vm2, %v5210_v17 }
 0x253   :  { %4465 = vmatmul.mubr.msk.f32.vlgmr.msra.gmra.mrb[26].mxu1 %vm6480_vm2, %v5220_v24 }
 0x254   :  { %4794 = vmatpush3.bf16.msra.mxu1 %v5649_v53  ;;  %4467 = vmatprep.mubr.msk.f32.mxu1 %vm6480_vm2, %v5222_v26 }
 0x255   :  { %4844 = vmatprep.subr.bf16.mxu1 %v6546_v30 }
 0x257   :  { %4468 = vmatmul.mubr.msk.f32.gmra.mrb[28].mxu1 %vm6480_vm2, %v5233_v33 }
 0x258   :  { %4470 = vmatprep.mubr.msk.f32.mxu1 %vm6480_vm2, %v5235_v36 }
 0x25b   :  { %4471 = vmatmul.mubr.msk.f32.gmra.mrb[30].mxu1 %vm6480_vm2, %v5270_v50 }
 0x25c   :  { %4473 = vmatprep.mubr.msk.f32.mxu1 %vm6480_vm2, %v5452_v38 }
 0x25f   :  { %4474 = vmatmul.mubr.f32.gmra.mrb[32].mxu1 %v6547_v40 }
 0x260   :  { %4480 = vmatprep.mubr.msk.f32.mxu1 %vm6480_vm2, %v1677_v48 }
 0x263   :  { %4481 = vmatmul.mubr.msk.f32.vlgmr.msra.gmra.mrb[26].mxu1 %vm6480_vm2, %v1678_v8 }
 0x264   :  { %4483 = vmatprep.mubr.msk.f32.mxu1 %vm6480_vm2, %v1679_v0  ;;  %4846 = vmatpush3.bf16.msra.mxu1 %v4796_v44 }
 0x267   :  { %4484 = vmatmul.mubr.msk.f32.gmra.mrb[28].mxu1 %vm6480_vm2, %v1680_v1 }
 0x268   :  { %4486 = vmatprep.mubr.msk.f32.mxu1 %vm6480_vm2, %v1681_v6 }
 0x26b   :  { %4487 = vmatmul.mubr.msk.f32.gmra.mrb[30].mxu1 %vm6480_vm2, %v1682_v42 }
 0x26c   :  { %4489 = vmatprep.mubr.msk.f32.mxu1 %vm6480_vm2, %v1683_v31 }
 0x26f   :  { %4490 = vmatmul.mubr.msk.f32.gmra.mrb[32].mxu1 %vm6480_vm2, %v5730_v56  ;;  %vm6485_vm2 = vcmp.lt.s32.totalorder %v5748_v37, 8 }
 0x270   :  { %4722 = vmatprep.mubr.msk.f32.mxu1 %vm6550_vm14, %v6547_v40  ;;  %v1842_v6 = vsel %vm6485_vm2, %v5206_v15, 0.0  ;;  %v1843_v44 = vsel %vm6485_vm2, %v5210_v17, 0.0  ;;  %v363_v15 = vadd.f32 %v354_v41, %v5745_v9  ;;  %v1844_v59 = vsel %vm6485_vm2, %v5220_v24, 0.0 }
 0x336   :  { %v4482_v57 = vpop.f32.mrb[26].mxu1 }
 0x337   :  { %v1827_v23 = vadd.f32 %v4482_v57, %v5753_v45  ;;  %v1775_v48 = vpop.f32.mrb[27].mxu1 }
 0x338   :  { %v1826_v20 = vadd.f32 %v5753_v45, %v1775_v48 }
 0x339   :  { %v1835_v8 = vmax.f32 %v1827_v23, 0.0 }
 0x33a   :  { %v1834_v0 = vmax.f32 %v1826_v20, 0.0  ;;  %v4485_v1 = vpop.f32.mrb[28].mxu1 }
 0x33b   :  { %v1785_v42 = vpop.f32.mrb[29].mxu1  ;;  %v1851_v29 = vadd.f32 %v1843_v44, %v1835_v8  ;;  %v1829_v61 = vadd.f32 %v4485_v1, %v5753_v45  ;;  %v1847_v44 = vsel %vm6485_vm2, %v5235_v36, 0.0 }
 0x33c   :  { %v1850_v31 = vadd.f32 %v1842_v6, %v1834_v0  ;;  %v1828_v22 = vadd.f32 %v5753_v45, %v1785_v42  ;;  %v372_v42 = vmul.f32 0.7978846, %v363_v15  ;;  %v327_v15 = vmul.f32 0.5, %v5745_v9  ;;  %v3937_v9 = vld [vmem:[%s6443_s0 + $0x58] sm:$0xff] }
 0x33d   :  { %v1837_v17 = vmax.f32 %v1829_v61, 0.0 }
 0x33e   :  { %v1858_v57 = vadd.f32 %v1850_v31, %v5138_v11  ;;  %v1836_v23 = vmax.f32 %v1828_v22, 0.0  ;;  %v4488_v48 = vpop.f32.mrb[30].mxu1  ;;  %v1859_v11 = vadd.f32 %v1851_v29, %v5143_v25  ;;  %4994 = vtanh.f32 %v372_v42  ;;  %v3943_v42 = vld [vmem:[%s6443_s0 + $0x88] sm:$0xff] }
 0x33f   :  { %v1795_v20 = vpop.f32.mrb[31].mxu1  ;;  %v1831_v31 = vadd.f32 %v4488_v48, %v5753_v45 }
 0x340   :  { %4497 = vmatmul.mubr.msk.f32.vlgmr.msra.gmra.mrb[0].mxu0 %vm6552_vm0, %v1858_v57  ;;  %v1852_v8 = vadd.f32 %v1844_v59, %v1836_v23  ;;  %v1830_v0 = vadd.f32 %v5753_v45, %v1795_v20 }
 0x341   :  { %4800 = vmatpush3.bf16.msra.mxu0 %v5051_v5  ;;  %4499 = vmatprep.mubr.msk.f32.mxu0 %vm6550_vm14, %v6547_v40  ;;  %v1845_v5 = vsel %vm6485_vm2, %v5222_v26, 0.0  ;;  %v1846_v26 = vsel %vm6485_vm2, %v5233_v33, 0.0 }
 0x342   :  { %v4491_v1 = vpop.f32.mrb[32].mxu1  ;;  %4801 = vmatprep.subr.bf16.mxu0 %v6546_v30  ;;  %v1853_v25 = vadd.f32 %v1845_v5, %v1837_v17  ;;  %v1860_v24 = vadd.f32 %v1852_v8, %v5147_v35  ;;  %v1838_v22 = vmax.f32 %v1830_v0, 0.0  ;;  %v1839_v30 = vmax.f32 %v1831_v31, 0.0  ;;  %v3939_v8 = vld [vmem:[%s6443_s0 + $0x68] sm:$0xff]  ;;  %v3940_v0 = vld [vmem:[%s6443_s0 + $0x70] sm:$0xff] }
 0x343   :  { %v1805_v6 = vpop.f32.mrb[33].mxu1  ;;  %v1833_v57 = vadd.f32 %v4491_v1, %v5753_v45  ;;  %v3941_v1 = vld [vmem:[%s6443_s0 + $0x78] sm:$0xff]  ;;  %v5889_v5 = vld [vmem:[%s6444_s2 + $0x10] ss:$0 sm:$0xff] }
 0x344   :  { %4500 = vmatmul.mubr.msk.f32.gmra.mrb[2].mxu0 %vm6552_vm0, %v1859_v11  ;;  %v1854_v41 = vadd.f32 %v1846_v26, %v1838_v22  ;;  %v1832_v35 = vadd.f32 %v5753_v45, %v1805_v6  ;;  %v1855_v29 = vadd.f32 %v1847_v44, %v1839_v30  ;;  %v3942_v6 = vld [vmem:[%s6443_s0 + $0x80] sm:$0xff]  ;;  %6564 = vst [vmem:[#allocation7_spill] sm:$0xff] %v5889_v5 }
 0x345   :  { %4502 = vmatprep.mubr.msk.f32.mxu0 %vm6550_vm14, %v6547_v40  ;;  %4803 = vmatpush3.bf16.msra.mxu0 %v5060_v7  ;;  %v1861_v7 = vadd.f32 %v1853_v25, %v5151_v34  ;;  %v1848_v34 = vsel %vm6485_vm2, %v5270_v50, 0.0  ;;  %v1841_v23 = vmax.f32 %v1833_v57, 0.0 }
 0x346   :  { %4805 = vmatprep.subr.bf16.mxu0 %v5122_v19  ;;  %v1862_v33 = vadd.f32 %v1854_v41, %v5155_v47  ;;  %v1840_v61 = vmax.f32 %v1832_v35, 0.0  ;;  %v1863_v36 = vadd.f32 %v1855_v29, %v5159_v51  ;;  %v1849_v47 = vsel %vm6485_vm2, %v5452_v38, 0.0  ;;  %vm6556_vm2 = vmmov %vm6552_vm0 }
 0x347   :  { %v1857_v50 = vadd.f32 %v1849_v47, %v1841_v23 }
 0x348   :  { %4503 = vmatmul.mubr.msk.f32.gmra.mrb[4].mxu0 %vm6553_vm1, %v1860_v24  ;;  %vm6554_vm1 = vmmov %vm6552_vm0  ;;  %v1856_v48 = vadd.f32 %v1848_v34, %v1840_v61  ;;  %v4995_v20 = vpop.eup %4994 }
 0x349   :  { %4505 = vmatprep.mubr.msk.f32.mxu0 %vm6550_vm14, %v6547_v40  ;;  %v390_v11 = vadd.f32 1.0, %v4995_v20  ;;  %v1865_v51 = vadd.f32 %v1857_v50, %v5167_v58  ;;  %v3936_v58 = vld [vmem:[%s6443_s0 + $0x50] sm:$0xff] }
 0x34a   :  { %v1864_v59 = vadd.f32 %v1856_v48, %v5163_v54  ;;  %v3935_v54 = vld [vmem:[%s6443_s0 + $0x48] sm:$0xff] }
 0x34b   :  { %v399_v17 = vmul.f32 %v390_v11, %v327_v15 }
 0x34c   :  { %4506 = vmatmul.mubr.msk.f32.gmra.mrb[6].mxu0 %vm6552_vm0, %v1861_v7 }
 0x34d   :  { %4508 = vmatprep.mubr.msk.f32.mxu0 %vm6550_vm14, %v6547_v40  ;;  %v1866_v38 = vadd.f32 %v399_v17, %v399_v17 }
 0x350   :  { %4509 = vmatmul.mubr.msk.f32.gmra.mrb[8].mxu0 %vm6554_vm1, %v1862_v33  ;;  %vm6555_vm1 = vmmov %vm6552_vm0 }
 0x351   :  { %4511 = vmatprep.mubr.msk.f32.mxu0 %vm6550_vm14, %v6547_v40 }
 0x354   :  { %4512 = vmatmul.mubr.msk.f32.gmra.mrb[10].mxu0 %vm6552_vm0, %v1863_v36 }
 0x355   :  { %4514 = vmatprep.mubr.msk.f32.mxu0 %vm6550_vm14, %v6547_v40 }
 0x358   :  { %4515 = vmatmul.mubr.msk.f32.gmra.mrb[12].mxu0 %vm6555_vm1, %v1864_v59  ;;  %vm6557_vm1 = vcmask 261120  }
 0x359   :  { %4517 = vmatprep.mubr.msk.f32.mxu0 %vm6550_vm14, %v6547_v40 }
 0x35c   :  { %4518 = vmatmul.mubr.msk.f32.gmra.mrb[14].mxu0 %vm6552_vm0, %v1865_v51  ;;  %vm6559_vm0 = vmmov %vm6557_vm1 }
 0x35d   :  { %4520 = vmatprep.mubr.msk.f32.mxu0 %vm6550_vm14, %v6547_v40 }
 0x360   :  { %4521 = vmatmul.mubr.msk.f32.gmra.mrb[16].mxu0 %vm6556_vm2, %v1866_v38  ;;  %vm6558_vm2 = vmmov %vm6557_vm1 }
 0x361   :  { %4531 = vmatprep.mubr.msk.f32.mxu0 %vm6550_vm14, %v6547_v40 }
 0x364   :  { %4532 = vmatmul.mubr.msk.f32.vlgmr.msra.gmra.mrb[18].mxu0 %vm6557_vm1, %v3935_v54  ;;  %vm6560_vm1 = vmmov %vm6559_vm0 }
 0x365   :  { %4534 = vmatprep.mubr.msk.f32.mxu0 %vm6550_vm14, %v6547_v40  ;;  %4807 = vmatpush3.bf16.msra.mxu0 %v5122_v19  ;;  %v3938_v19 = vld [vmem:[%s6443_s0 + $0x60] sm:$0xff] }
 0x366   :  { %4809 = vmatprep.subr.bf16.mxu0 %v5180_v63 }
 0x368   :  { %4535 = vmatmul.mubr.msk.f32.gmra.mrb[20].mxu0 %vm6558_vm2, %v3936_v58  ;;  %vm6561_vm2 = vmmov %vm6559_vm0  ;;  %v5939_v58 = vld [vmem:[%s6442_s1 + $0x20] ss:$0 sm:$0xff] }
 0x369   :  { %4537 = vmatprep.mubr.msk.f32.mxu0 %vm6550_vm14, %v6547_v40 }
 0x36c   :  { %4538 = vmatmul.mubr.msk.f32.gmra.mrb[22].mxu0 %vm6559_vm0, %v3937_v9 }
 0x36d   :  { %4540 = vmatprep.mubr.msk.f32.mxu0 %vm6550_vm14, %v6547_v40 }
 0x370   :  { %4541 = vmatmul.mubr.msk.f32.gmra.mrb[24].mxu0 %vm6560_vm1, %v3938_v19  ;;  %vm6562_vm1 = vmmov %vm6559_vm0 }
 0x371   :  { %4543 = vmatprep.mubr.msk.f32.mxu0 %vm6550_vm14, %v6547_v40 }
 0x374   :  { %4544 = vmatmul.mubr.msk.f32.gmra.mrb[26].mxu0 %vm6561_vm2, %v3939_v8  ;;  %vm6563_vm2 = vmmov %vm6559_vm0 }
 0x375   :  { %4546 = vmatprep.mubr.msk.f32.mxu0 %vm6550_vm14, %v6547_v40 }
 0x378   :  { %4547 = vmatmul.mubr.msk.f32.gmra.mrb[28].mxu0 %vm6559_vm0, %v3940_v0 }
 0x379   :  { %4549 = vmatprep.mubr.msk.f32.mxu0 %vm6550_vm14, %v6547_v40 }
 0x37c   :  { %4550 = vmatmul.mubr.msk.f32.gmra.mrb[30].mxu0 %vm6562_vm1, %v3941_v1  ;;  %vm6565_vm1 = vmmov %vm6559_vm0 }
 0x37d   :  { %4552 = vmatprep.mubr.msk.f32.mxu0 %vm6550_vm14, %v6547_v40 }
 0x380   :  { %4553 = vmatmul.mubr.msk.f32.gmra.mrb[32].mxu0 %vm6563_vm2, %v3942_v6  ;;  %vm6566_vm2 = vmmov %vm6559_vm0 }
 0x381   :  { %4555 = vmatprep.mubr.msk.f32.mxu0 %vm6550_vm14, %v6547_v40 }
 0x384   :  { %4556 = vmatmul.mubr.msk.f32.gmra.mrb[34].mxu0 %vm6559_vm0, %v3943_v42 }
 0x413   :  { %v1964_v25 = vpop.f32.mrb[0].mxu0 }
 0x414   :  { %v1965_v24 = vadd.f32 %v5889_v5, %v1964_v25  ;;  %v4498_v31 = vpop.f32.mrb[1].mxu0 }
 0x416   :  { %2008 = vst.msk [vmem:[%s6445_s3] sm:$0xff] %vm6565_vm1, %v1965_v24  ;;  %vm6567_vm1 = vmmov %vm6559_vm0 }
 0x417   :  { %v1969_v22 = vpop.f32.mrb[2].mxu0 }
 0x418   :  { %v1970_v26 = vadd.f32 %v5889_v5, %v1969_v22  ;;  %v4501_v7 = vpop.f32.mrb[3].mxu0 }
 0x41a   :  { %2009 = vst.msk [vmem:[%s6445_s3 + $0x8] sm:$0xff] %vm6566_vm2, %v1970_v26  ;;  %vm6568_vm2 = vmmov %vm6559_vm0 }
 0x41b   :  { %v1974_v30 = vpop.f32.mrb[4].mxu0 }
 0x41c   :  { %v1975_v41 = vadd.f32 %v5889_v5, %v1974_v30  ;;  %v4504_v35 = vpop.f32.mrb[5].mxu0 }
 0x41e   :  { %2010 = vst.msk [vmem:[%s6445_s3 + $0x10] sm:$0xff] %vm6559_vm0, %v1975_v41 }
 0x41f   :  { %v1979_v44 = vpop.f32.mrb[6].mxu0 }
 0x420   :  { %v1980_v29 = vadd.f32 %v5889_v5, %v1979_v44  ;;  %v4507_v33 = vpop.f32.mrb[7].mxu0 }
 0x422   :  { %2011 = vst.msk [vmem:[%s6445_s3 + $0x18] sm:$0xff] %vm6567_vm1, %v1980_v29  ;;  %vm6569_vm1 = vmmov %vm6559_vm0 }
 0x423   :  { %v1984_v57 = vpop.f32.mrb[8].mxu0 }
 0x424   :  { %v1985_v61 = vadd.f32 %v5889_v5, %v1984_v57  ;;  %v4510_v34 = vpop.f32.mrb[9].mxu0 }
 0x426   :  { %2012 = vst.msk [vmem:[%s6445_s3 + $0x20] sm:$0xff] %vm6568_vm2, %v1985_v61  ;;  %vm6570_vm2 = vmmov %vm6559_vm0 }
 0x427   :  { %v1989_v36 = vpop.f32.mrb[10].mxu0 }
 0x428   :  { %v1990_v23 = vadd.f32 %v5889_v5, %v1989_v36  ;;  %v4513_v48 = vpop.f32.mrb[11].mxu0 }
 0x42a   :  { %2013 = vst.msk [vmem:[%s6445_s3 + $0x28] sm:$0xff] %vm6559_vm0, %v1990_v23 }
 0x42b   :  { %v1994_v20 = vpop.f32.mrb[12].mxu0 }
 0x42c   :  { %v1995_v47 = vadd.f32 %v5889_v5, %v1994_v20  ;;  %v4516_v15 = vpop.f32.mrb[13].mxu0 }
 0x42e   :  { %2014 = vst.msk [vmem:[%s6445_s3 + $0x30] sm:$0xff] %vm6569_vm1, %v1995_v47  ;;  %vm6571_vm1 = vcmask 130048  }
 0x42f   :  { %v1999_v50 = vpop.f32.mrb[14].mxu0 }
 0x430   :  { %v2000_v59 = vadd.f32 %v5889_v5, %v1999_v50  ;;  %v4519_v11 = vpop.f32.mrb[15].mxu0 }
 0x432   :  { %2015 = vst.msk [vmem:[%s6445_s3 + $0x38] sm:$0xff] %vm6570_vm2, %v2000_v59  ;;  %vm6572_vm2 = vmmov %vm6571_vm1 }
 0x433   :  { %v2004_v51 = vpop.f32.mrb[16].mxu0 }
 0x434   :  { %v2005_v17 = vadd.f32 %v5889_v5, %v2004_v51  ;;  %v4522_v38 = vpop.f32.mrb[17].mxu0 }
 0x436   :  { %2016 = vst.msk [vmem:[%s6445_s3 + $0x40] sm:$0xff] %vm6559_vm0, %v2005_v17  ;;  %vm6573_vm0 = vmmov %vm6571_vm1 }
 0x437   :  { %v2120_v54 = vpop.f32.mrb[18].mxu0  ;;  %vm6581_vm14 = vmmov %vm6573_vm0 }
 0x438   :  { %v2121_v9 = vadd.f32 %v5939_v58, %v2120_v54  ;;  %v4533_v19 = vpop.f32.mrb[19].mxu0 }
 0x43a   :  { %v2173_v8 = vmul.f32 %v2121_v9, %v2121_v9 }
 0x43b   :  { %v2125_v0 = vpop.f32.mrb[20].mxu0 }
 0x43c   :  { %v2182_v1 = vmul.f32 %v2173_v8, %v2121_v9  ;;  %v2126_v6 = vadd.f32 %v5939_v58, %v2125_v0  ;;  %v4536_v42 = vpop.f32.mrb[21].mxu0 }
 0x43e   :  { %v2191_v25 = vmul.f32 0.044715, %v2182_v1  ;;  %v2174_v24 = vmul.f32 %v2126_v6, %v2126_v6 }
 0x43f   :  { %v2130_v31 = vpop.f32.mrb[22].mxu0 }
 0x440   :  { %v2200_v22 = vadd.f32 %v2191_v25, %v2121_v9  ;;  %v2183_v26 = vmul.f32 %v2174_v24, %v2126_v6  ;;  %v2131_v7 = vadd.f32 %v5939_v58, %v2130_v31  ;;  %v4539_v30 = vpop.f32.mrb[23].mxu0  ;;  %v2164_v31 = vmul.f32 0.5, %v2121_v9 }
 0x442   :  { %v2209_v41 = vmul.f32 0.7978846, %v2200_v22  ;;  %v2192_v35 = vmul.f32 0.044715, %v2183_v26  ;;  %v2175_v44 = vmul.f32 %v2131_v7, %v2131_v7 }
 0x443   :  { %v2135_v29 = vpop.f32.mrb[24].mxu0 }
 0x444   :  { %4996 = vtanh.f32 %v2209_v41  ;;  %v2201_v33 = vadd.f32 %v2192_v35, %v2126_v6  ;;  %v2184_v57 = vmul.f32 %v2175_v44, %v2131_v7  ;;  %v2136_v61 = vadd.f32 %v5939_v58, %v2135_v29  ;;  %v4542_v34 = vpop.f32.mrb[25].mxu0 }
 0x446   :  { %v2210_v36 = vmul.f32 0.7978846, %v2201_v33  ;;  %v2193_v23 = vmul.f32 0.044715, %v2184_v57  ;;  %v2176_v48 = vmul.f32 %v2136_v61, %v2136_v61 }
 0x447   :  { %v2140_v20 = vpop.f32.mrb[26].mxu0 }
 0x448   :  { %4998 = vtanh.f32 %v2210_v36  ;;  %v2202_v47 = vadd.f32 %v2193_v23, %v2131_v7  ;;  %v2185_v15 = vmul.f32 %v2176_v48, %v2136_v61  ;;  %v2141_v50 = vadd.f32 %v5939_v58, %v2140_v20  ;;  %v4545_v59 = vpop.f32.mrb[27].mxu0 }
 0x449   :  { %v2165_v23 = vmul.f32 0.5, %v2126_v6 }
 0x44a   :  { %v2211_v11 = vmul.f32 0.7978846, %v2202_v47  ;;  %v2194_v51 = vmul.f32 0.044715, %v2185_v15  ;;  %v2177_v17 = vmul.f32 %v2141_v50, %v2141_v50 }
 0x44b   :  { %v2145_v38 = vpop.f32.mrb[28].mxu0 }
 0x44c   :  { %5000 = vtanh.f32 %v2211_v11  ;;  %v2203_v54 = vadd.f32 %v2194_v51, %v2136_v61  ;;  %v2186_v19 = vmul.f32 %v2177_v17, %v2141_v50  ;;  %v2146_v8 = vadd.f32 %v5939_v58, %v2145_v38  ;;  %v4548_v0 = vpop.f32.mrb[29].mxu0 }
 0x44e   :  { %v4997_v1 = vpop.eup %4996  ;;  %v2212_v42 = vmul.f32 0.7978846, %v2203_v54  ;;  %v2195_v25 = vmul.f32 0.044715, %v2186_v19  ;;  %v2178_v24 = vmul.f32 %v2146_v8, %v2146_v8  ;;  %v2166_v19 = vmul.f32 0.5, %v2131_v7 }
 0x44f   :  { %v2150_v22 = vpop.f32.mrb[30].mxu0  ;;  %v2227_v26 = vadd.f32 1.0, %v4997_v1 }
 0x450   :  { %5002 = vtanh.f32 %v2212_v42  ;;  %v2204_v30 = vadd.f32 %v2195_v25, %v2141_v50  ;;  %v2187_v41 = vmul.f32 %v2178_v24, %v2146_v8  ;;  %v2151_v35 = vadd.f32 %v5939_v58, %v2150_v22  ;;  %v4551_v44 = vpop.f32.mrb[31].mxu0 }
 0x451   :  { %v5948_v29 = vmul.f32 %v2227_v26, %v2164_v31  ;;  %v2167_v22 = vmul.f32 0.5, %v2136_v61  ;;  %v2169_v61 = vmul.f32 0.5, %v2146_v8 }
 0x452   :  { %v4999_v33 = vpop.eup %4998  ;;  %v2213_v57 = vmul.f32 0.7978846, %v2204_v30  ;;  %v2196_v34 = vmul.f32 0.044715, %v2187_v41  ;;  %v2179_v36 = vmul.f32 %v2151_v35, %v2151_v35 }
 0x453   :  { %v2228_v48 = vadd.f32 1.0, %v4999_v33  ;;  %v2155_v20 = vpop.f32.mrb[32].mxu0  ;;  %4562 = vmatprep.mubr.msk.f32.mxu0 %vm6571_vm1, %v5948_v29  ;;  %v2168_v33 = vmul.f32 0.5, %v2141_v50  ;;  %vm6574_vm1 = vmmov %vm6573_vm0 }
 0x454   :  { %5004 = vtanh.f32 %v2213_v57  ;;  %v2205_v9 = vadd.f32 %v2196_v34, %v2146_v8  ;;  %v2188_v47 = vmul.f32 %v2179_v36, %v2151_v35  ;;  %v2156_v15 = vadd.f32 %v5939_v58, %v2155_v20  ;;  %v4554_v59 = vpop.f32.mrb[33].mxu0 }
 0x455   :  { %v5953_v11 = vmul.f32 %v2228_v48, %v2165_v23  ;;  %v2170_v20 = vmul.f32 0.5, %v2151_v35 }
 0x456   :  { %v5001_v51 = vpop.eup %5000  ;;  %v2214_v17 = vmul.f32 0.7978846, %v2205_v9  ;;  %v2197_v38 = vmul.f32 0.044715, %v2188_v47  ;;  %v2180_v54 = vmul.f32 %v2156_v15, %v2156_v15  ;;  %v2171_v59 = vmul.f32 0.5, %v2156_v15 }
 0x457   :  { %4563 = vmatmul.mubr.msk.f32.vlgmr.msra.gmra.mrb[36].mxu0 %vm6572_vm2, %v5953_v11  ;;  %v2229_v6 = vadd.f32 1.0, %v5001_v51  ;;  %vm6575_vm2 = vmmov %vm6573_vm0 }
 0x458   :  { %5006 = vtanh.f32 %v2214_v17  ;;  %v2206_v0 = vadd.f32 %v2197_v38, %v2151_v35  ;;  %v2189_v1 = vmul.f32 %v2180_v54, %v2156_v15  ;;  %4811 = vmatpush3.bf16.msra.mxu0 %v5180_v63  ;;  %v5984_v35 = vpop.f32.mrb[34].mxu0  ;;  %v5989_v54 = vld [vmem:[%s6442_s1 + $0x38] ss:$0 sm:$0xff] }
 0x459   :  { %v5958_v42 = vmul.f32 %v2229_v6, %v2166_v19  ;;  %4813 = vmatprep.subr.bf16.mxu0 %v5190_v3  ;;  %v4557_v17 = vpop.f32.mrb[35].mxu0 }
 0x45a   :  { %v5003_v25 = vpop.eup %5002  ;;  %v2215_v24 = vmul.f32 0.7978846, %v2206_v0  ;;  %v2198_v31 = vmul.f32 0.044715, %v2189_v1  ;;  %v6584_v17 = vld [vmem:[#allocation2_spill] sm:$0xff] }
 0x45b   :  { %4565 = vmatprep.mubr.msk.f32.mxu0 %vm6573_vm0, %v5958_v42  ;;  %v2230_v7 = vadd.f32 1.0, %v5003_v25 }
 0x45c   :  { %5008 = vtanh.f32 %v2215_v24  ;;  %v2207_v26 = vadd.f32 %v2198_v31, %v2156_v15 }
 0x45d   :  { %v5963_v30 = vmul.f32 %v2230_v7, %v2167_v22 }
 0x45e   :  { %v5005_v41 = vpop.eup %5004  ;;  %v2216_v44 = vmul.f32 0.7978846, %v2207_v26 }
 0x45f   :  { %4566 = vmatmul.mubr.msk.f32.gmra.mrb[38].mxu0 %vm6574_vm1, %v5963_v30  ;;  %v2231_v63 = vadd.f32 1.0, %v5005_v41  ;;  %vm6576_vm1 = vmmov %vm6573_vm0 }
 0x460   :  { %5010 = vtanh.f32 %v2216_v44 }
 0x461   :  { %v5967_v57 = vmul.f32 %v2231_v63, %v2168_v33 }
 0x462   :  { %v5007_v34 = vpop.eup %5006 }
 0x463   :  { %4568 = vmatprep.mubr.msk.f32.mxu0 %vm6575_vm2, %v5967_v57  ;;  %v2232_v36 = vadd.f32 1.0, %v5007_v34  ;;  %vm6577_vm2 = vmmov %vm6573_vm0 }
 0x465   :  { %v5971_v23 = vmul.f32 %v2232_v36, %v2169_v61 }
 0x466   :  { %v5009_v48 = vpop.eup %5008 }
 0x467   :  { %4569 = vmatmul.mubr.msk.f32.gmra.mrb[40].mxu0 %vm6573_vm0, %v5971_v23  ;;  %v2233_v50 = vadd.f32 1.0, %v5009_v48 }
 0x469   :  { %v5975_v9 = vmul.f32 %v2233_v50, %v2170_v20 }
 0x46a   :  { %v5011_v47 = vpop.eup %5010 }
 0x46b   :  { %4571 = vmatprep.mubr.msk.f32.mxu0 %vm6576_vm1, %v5975_v9  ;;  %v2234_v8 = vadd.f32 1.0, %v5011_v47  ;;  %vm6578_vm1 = vmmov %vm6573_vm0 }
 0x46d   :  { %v5979_v51 = vmul.f32 %v2234_v8, %v2171_v59 }
 0x46f   :  { %4572 = vmatmul.mubr.msk.f32.gmra.mrb[42].mxu0 %vm6577_vm2, %v5979_v51  ;;  %vm6579_vm2 = vmmov %vm6573_vm0 }
 0x470   :  { %4578 = vmatprep.mubr.f32.mxu0 %v6547_v40 }
 0x52a   :  { %v4564_v38 = vpop.f32.mrb[36].mxu0 }
 0x52b   :  { %v2341_v15 = vadd.f32 %v5989_v54, %v4564_v38  ;;  %v2335_v19 = vpop.f32.mrb[37].mxu0 }
 0x52c   :  { %v2336_v6 = vadd.f32 %v5989_v54, %v2335_v19 }
 0x52d   :  { %v5995_v1 = vmax.f32 %v2341_v15, 0.0 }
 0x52e   :  { %v5993_v0 = vmax.f32 %v2336_v6, 0.0 }
 0x52f   :  { %v2391_v50 = vrot.slane %v5995_v1, 7 }
 0x530   :  { %4579 = vmatmul.mubr.msk.f32.vlgmr.msra.gmra.mrb[44].mxu0 %vm6573_vm0, %v5993_v0  ;;  %v2389_v48 = vrot.slane %v5993_v0, 7 }
 0x531   :  { %4581 = vmatprep.mubr.msk.f32.mxu0 %vm6578_vm1, %v5995_v1  ;;  %4815 = vmatpush3.bf16.msra.mxu0 %v5190_v3  ;;  %vm6580_vm1 = vmmov %vm6573_vm0 }
 0x532   :  { %v4567_v25 = vpop.f32.mrb[38].mxu0  ;;  %4817 = vmatprep.subr.bf16.mxu0 %v5208_v16 }
 0x533   :  { %v2351_v24 = vadd.f32 %v5989_v54, %v4567_v25  ;;  %v2345_v31 = vpop.f32.mrb[39].mxu0 }
 0x534   :  { %v2346_v22 = vadd.f32 %v5989_v54, %v2345_v31 }
 0x535   :  { %v6007_v26 = vmax.f32 %v2351_v24, 0.0 }
 0x536   :  { %v6005_v7 = vmax.f32 %v2346_v22, 0.0 }
 0x537   :  { %v2395_v15 = vrot.slane %v6007_v26, 7 }
 0x538   :  { %4582 = vmatmul.mubr.msk.f32.gmra.mrb[46].mxu0 %vm6579_vm2, %v6005_v7  ;;  %vm6582_vm2 = vmmov %vm6573_vm0  ;;  %v2393_v8 = vrot.slane %v6005_v7, 7 }
 0x539   :  { %4584 = vmatprep.mubr.msk.f32.mxu0 %vm6573_vm0, %v6007_v26  ;;  %vm6583_vm0 = vcmask 1040384   ;;  %vm6587_vm4 = vmmov %vm6582_vm2 }
 0x53a   :  { %v4570_v41 = vpop.f32.mrb[40].mxu0  ;;  %v6032_v59 = vsel %vm6583_vm0, %v5251_v43, %v2389_v48 }
 0x53b   :  { %v2361_v3 = vadd.f32 %v5989_v54, %v4570_v41  ;;  %v2355_v44 = vpop.f32.mrb[41].mxu0  ;;  %v2410_v19 = vsel %vm5289_vm5, %v6032_v59, 0.0  ;;  %v6591_v41 = vld [vmem:[#allocation3_spill] sm:$0xff] }
 0x53c   :  { %v2356_v33 = vadd.f32 %v5989_v54, %v2355_v44 }
 0x53d   :  { %v6017_v34 = vmax.f32 %v2361_v3, 0.0 }
 0x53e   :  { %v6015_v63 = vmax.f32 %v2356_v33, 0.0 }
 0x53f   :  { %v2399_v22 = vrot.slane %v6017_v34, 7 }
 0x540   :  { %4585 = vmatmul.mubr.msk.f32.gmra.mrb[48].mxu0 %vm6580_vm1, %v6015_v63  ;;  %v2397_v24 = vrot.slane %v6015_v63, 7 }
 0x541   :  { %4587 = vmatprep.mubr.msk.f32.mxu0 %vm6581_vm14, %v6017_v34  ;;  %vm6585_vm14 = vmmov %vm6580_vm1 }
 0x542   :  { %v4573_v61 = vpop.f32.mrb[42].mxu0  ;;  %vm6586_vm1 = vmmov %vm6583_vm0 }
 0x543   :  { %v2365_v36 = vpop.f32.mrb[43].mxu0  ;;  %v6038_v38 = vsel %vm6586_vm1, %v2389_v48, %v2391_v50  ;;  %v2663_v48 = vrot.slane %v5993_v0, 1 }
 0x544   :  { %v2366_v20 = vadd.f32 %v5989_v54, %v2365_v36  ;;  %v2411_v6 = vsel %vm5299_vm6, %v6038_v38, 0.0 }
 0x546   :  { %v6026_v47 = vmax.f32 %v2366_v20, 0.0 }
 0x548   :  { %4588 = vmatmul.mubr.msk.f32.gmra.mrb[50].mxu0 %vm6582_vm2, %v6026_v47  ;;  %vm6588_vm2 = vmmov %vm6583_vm0  ;;  %v6489_v33 = vrot.slane %v6026_v47, 7 }
 0x549   :  { %4594 = vmatprep.mubr.msk.f32.mxu0 %vm6585_vm14, %v6584_v17  ;;  %v6049_v25 = vsel %vm6588_vm2, %v2391_v50, %v2393_v8  ;;  %vm6589_vm0 = vmmov %vm6587_vm4  ;;  %v2665_v17 = vrot.slane %v5995_v1, 1 }
 0x54a   :  { %vm6590_vm14 = vmmov %vm6586_vm1  ;;  %v2412_v3 = vsel %vm5321_vm7, %v6049_v25, 0.0 }
 0x54b   :  { %v6055_v31 = vsel %vm6590_vm14, %v2393_v8, %v2395_v15  ;;  %vm6593_vm2 = vmmov %vm6589_vm0 }
 0x54c   :  { %4595 = vmatmul.mubr.msk.f32.vlgmr.msra.gmra.mrb[44].mxu0 %vm6587_vm4, %v2410_v19  ;;  %vm6592_vm4 = vmmov %vm6589_vm0  ;;  %v2413_v44 = vsel %vm5341_vm8, %v6055_v31, 0.0  ;;  %v2667_v19 = vrot.slane %v6005_v7, 1 }
 0x54d   :  { %4819 = vmatpush3.bf16.msra.mxu0 %v5208_v16  ;;  %4597 = vmatprep.mubr.msk.f32.mxu0 %vm6589_vm0, %v2411_v6  ;;  %v6067_v16 = vsel %vm6586_vm1, %v2395_v15, %v2397_v24  ;;  %vm6594_vm0 = vmmov %vm6586_vm1 }
 0x54e   :  { %4821 = vmatprep.subr.bf16.mxu0 %v6591_v41  ;;  %v6072_v36 = vsel %vm6594_vm0, %v2397_v24, %v2399_v22  ;;  %v2414_v20 = vsel %vm5356_vm9, %v6067_v16, 0.0  ;;  %vm6595_vm14 = vmmov %vm6593_vm2  ;;  %v2371_v24 = vadd.f32 %v5989_v54, %v4573_v61 }
 0x54f   :  { %v2415_v50 = vsel %vm5370_vm10, %v6072_v36, 0.0  ;;  %vm6597_vm1 = vmmov %vm6593_vm2 }
 0x550   :  { %4598 = vmatmul.mubr.msk.f32.gmra.mrb[46].mxu0 %vm6592_vm4, %v2412_v3  ;;  %vm6596_vm4 = vmmov %vm6594_vm0  ;;  %v6108_v54 = vmax.f32 %v2371_v24, 0.0  ;;  %v6607_v24 = vld [vmem:[#allocation4_spill] sm:$0xff] }
 0x551   :  { %4600 = vmatprep.mubr.msk.f32.mxu0 %vm6593_vm2, %v2413_v44  ;;  %v6085_v8 = vsel %vm6596_vm4, %v2399_v22, %v6489_v33  ;;  %vm6598_vm2 = vcmask 1046528   ;;  %vm6599_vm0 = vmmov %vm6597_vm1  ;;  %v2669_v44 = vrot.slane %v6007_v26, 1 }
 0x552   :  { %v2664_v15 = vsel %vm6598_vm2, %v5378_v46, %v2663_v48  ;;  %v2416_v6 = vsel %vm5388_vm12, %v6085_v8, 0.0  ;;  %vm6601_vm4 = vmmov %vm6599_vm0  ;;  %v3249_v2 = vsel %vm5356_vm9, %v6085_v8, 0.0 }
 0x553   :  { %v2687_v22 = vsel %vm5401_vm13, %v2664_v15, 0.0  ;;  %v2673_v15 = vrot.slane %v6017_v34, 1 }
 0x554   :  { %4601 = vmatmul.mubr.msk.f32.gmra.mrb[48].mxu0 %vm6595_vm14, %v2414_v20  ;;  %vm6600_vm14 = vmmov %vm6598_vm2 }
 0x555   :  { %4603 = vmatprep.mubr.msk.f32.mxu0 %vm6597_vm1, %v2415_v50  ;;  %v2666_v3 = vsel %vm6600_vm14, %v2663_v48, %v2665_v17  ;;  %vm6602_vm1 = vmmov %vm6598_vm2  ;;  %v2671_v50 = vrot.slane %v6015_v63, 1 }
 0x556   :  { %v6103_v20 = vsel %vm6602_vm1, %v2665_v17, %v2667_v19  ;;  %v2688_v33 = vsel %vm6548_vm11, %v2666_v3, 0.0  ;;  %vm6603_vm2 = vmmov %vm6599_vm0 }
 0x557   :  { %v2689_v61 = vsel %vm5433_vm15, %v6103_v20, 0.0  ;;  %vm6605_vm14 = vmmov %vm6603_vm2  ;;  %vm6612_vm15 = vnez %v6531_v4 }
 0x558   :  { %4604 = vmatmul.mubr.msk.f32.gmra.mrb[50].mxu0 %vm6599_vm0, %v2416_v6  ;;  %vm6604_vm0 = vmmov %vm6602_vm1  ;;  %v2675_v6 = vrot.slane %v6026_v47, 1 }
 0x559   :  { %4610 = vmatprep.mubr.msk.f32.mxu0 %vm6601_vm4, %v2687_v22  ;;  %v6115_v48 = vsel %vm6604_vm0, %v2667_v19, %v2669_v44  ;;  %vm6606_vm4 = vmmov %vm6604_vm0  ;;  %v2677_v22 = vrot.slane %v6108_v54, 1 }
 0x55a   :  { %v6121_v17 = vsel %vm6606_vm4, %v2669_v44, %v2671_v50  ;;  %vm6608_vm1 = vmmov %vm6603_vm2 }
 0x55b   :  { %vm6611_vm4 = vmmov %vm6604_vm0 }
 0x55c   :  { %4611 = vmatmul.mubr.msk.f32.vlgmr.msra.gmra.mrb[44].mxu0 %vm6603_vm2, %v2688_v33  ;;  %v2690_v33 = vsel %vm6549_vm3, %v6115_v48, 0.0  ;;  %vm6609_vm2 = vnez %v6528_v39  ;;  %v6138_v44 = vsel %vm6611_vm4, %v2673_v15, %v2675_v6  ;;  %vm6613_vm3 = vmmov %vm6608_vm1 }
 0x55d   :  { %4823 = vmatpush3.bf16.msra.mxu0 %v6591_v41  ;;  %4613 = vmatprep.mubr.msk.f32.mxu0 %vm6605_vm14, %v2689_v61  ;;  %v2691_v19 = vsel %vm6609_vm2, %v6121_v17, 0.0  ;;  %v6133_v41 = vsel %vm6604_vm0, %v2671_v50, %v2673_v15  ;;  %vm6610_vm14 = vmmov %vm6608_vm1 }
 0x55e   :  { %4825 = vmatprep.subr.bf16.mxu0 %v6607_v24  ;;  %v2692_v61 = vsel %vm6612_vm15, %v6133_v41, 0.0  ;;  %vm6615_vm2 = vmmov %vm6604_vm0  ;;  %vm6619_vm15 = vnez %v6499_v49  ;;  %v3247_v49 = vsel %vm5321_vm7, %v6067_v16, 0.0 }
 0x55f   :  { %v6148_v50 = vsel %vm6615_vm2, %v2675_v6, %v2677_v22  ;;  %vm6616_vm0 = vmmov %vm6613_vm3  ;;  %v2837_v6 = vsel %vm5299_vm6, %v6049_v25, 0.0 }
 0x560   :  { %4614 = vmatmul.mubr.msk.f32.gmra.mrb[46].mxu0 %vm6608_vm1, %v2690_v33  ;;  %vm6614_vm1 = vnez %v6533_v14  ;;  %vm6618_vm4 = vmmov %vm6616_vm0 }
 0x561   :  { %4616 = vmatprep.mubr.msk.f32.mxu0 %vm6610_vm14, %v2691_v19  ;;  %v2693_v33 = vsel %vm6614_vm1, %v6138_v44, 0.0  ;;  %vm6617_vm14 = vnez %v6535_v28  ;;  %v2835_v19 = vsel %vm6619_vm15, %v6032_v59, 0.0  ;;  %vm6621_vm2 = vmmov %vm6616_vm0  ;;  %v2838_v59 = vsel %vm5321_vm7, %v6055_v31, 0.0 }
 0x562   :  { %v2694_v15 = vsel %vm6617_vm14, %v6148_v50, 0.0 }
 0x564   :  { %4617 = vmatmul.mubr.msk.f32.gmra.mrb[48].mxu0 %vm6613_vm3, %v2692_v61  ;;  %vm6620_vm3 = vmmov %vm6616_vm0  ;;  %v2836_v61 = vsel %vm5289_vm5, %v6038_v38, 0.0 }
 0x565   :  { %4619 = vmatprep.mubr.msk.f32.mxu0 %vm6616_vm0, %v2693_v33  ;;  %v6622_v33 = vld [vmem:[#allocation5_spill] sm:$0xff] }
 0x568   :  { %4620 = vmatmul.mubr.msk.f32.gmra.mrb[50].mxu0 %vm6618_vm4, %v2694_v15  ;;  %vm6623_vm4 = vmmov %vm6616_vm0  ;;  %v2839_v15 = vsel %vm5341_vm8, %v6067_v16, 0.0 }
 0x569   :  { %4626 = vmatprep.mubr.msk.f32.mxu0 %vm6620_vm3, %v2835_v19  ;;  %v2832_v19 = vrot.slane %v6108_v54, 7  ;;  %vm6624_vm3 = vmmov %vm6616_vm0 }
 0x56c   :  { %4627 = vmatmul.mubr.msk.f32.vlgmr.msra.gmra.mrb[44].mxu0 %vm6621_vm2, %v2836_v61  ;;  %vm6625_vm2 = vmmov %vm6616_vm0  ;;  %v2841_v61 = vsel %vm5370_vm10, %v6085_v8, 0.0 }
 0x56d   :  { %4827 = vmatpush3.bf16.msra.mxu0 %v6607_v24  ;;  %4629 = vmatprep.mubr.msk.f32.mxu0 %vm6616_vm0, %v2837_v6  ;;  %v2840_v24 = vsel %vm5356_vm9, %v6072_v36, 0.0  ;;  %v6626_v6 = vrot.slane %v6026_v47, 7  ;;  %vm6627_vm0 = vcmask 1040384   ;;  %vm6630_vm8 = vmmov %vm6625_vm2 }
 0x56e   :  { %4829 = vmatprep.subr.bf16.mxu0 %v6622_v33  ;;  %vm6631_vm10 = vmmov %vm6625_vm2 }
 0x570   :  { %4630 = vmatmul.mubr.msk.f32.gmra.mrb[46].mxu0 %vm6623_vm4, %v2838_v59  ;;  %v2833_v59 = vsel %vm6627_vm0, %v6626_v6, %v2832_v19  ;;  %vm6628_vm4 = vmmov %vm6625_vm2 }
 0x571   :  { %4632 = vmatprep.mubr.msk.f32.mxu0 %vm6624_vm3, %v2839_v15  ;;  %v2842_v5 = vsel %vm5388_vm12, %v2833_v59, 0.0  ;;  %vm6629_vm3 = vmmov %vm6625_vm2  ;;  %v6632_v15 = vld [vmem:[#allocation6_spill] sm:$0xff] }
 0x572   :  { %vm6633_vm0 = vmmov %vm6625_vm2 }
 0x573   :  { %vm6657_vm7 = vmmov %vm6633_vm0 }
 0x574   :  { %4633 = vmatmul.mubr.msk.f32.gmra.mrb[48].mxu0 %vm6625_vm2, %v2840_v24  ;;  %vm6659_vm9 = vmmov %vm6633_vm0 }
 0x575   :  { %4635 = vmatprep.mubr.msk.f32.mxu0 %vm6628_vm4, %v2841_v61  ;;  %vm6634_vm4 = vmmov %vm6633_vm0 }
 0x578   :  { %4636 = vmatmul.mubr.msk.f32.gmra.mrb[50].mxu0 %vm6629_vm3, %v2842_v5  ;;  %vm6635_vm3 = vmmov %vm6633_vm0  ;;  %v3097_v5 = vsel %vm5401_vm13, %v2666_v3, 0.0 }
 0x579   :  { %4642 = vmatprep.mubr.msk.f32.mxu0 %vm6630_vm8, %v5993_v0  ;;  %vm6636_vm8 = vmmov %vm6633_vm0 }
 0x57c   :  { %4643 = vmatmul.mubr.msk.f32.vlgmr.msra.gmra.mrb[44].mxu0 %vm6625_vm2, %v5995_v1  ;;  %vm6637_vm2 = vmmov %vm6633_vm0 }
 0x57d   :  { %4831 = vmatpush3.bf16.msra.mxu0 %v6622_v33  ;;  %4645 = vmatprep.mubr.msk.f32.mxu0 %vm6631_vm10, %v6005_v7  ;;  %vm6638_vm10 = vmmov %vm6633_vm0  ;;  %v3098_v33 = vsel %vm6548_vm11, %v6103_v20, 0.0 }
 0x57e   :  { %4833 = vmatprep.subr.bf16.mxu0 %v6632_v15  ;;  %vm6645_vm11 = vmmov %vm6633_vm0 }
 0x580   :  { %4646 = vmatmul.mubr.msk.f32.gmra.mrb[46].mxu0 %vm6633_vm0, %v6007_v26 }
 0x581   :  { %4648 = vmatprep.mubr.msk.f32.mxu0 %vm6634_vm4, %v6015_v63  ;;  %vm6639_vm4 = vnez %v6521_v55 }
 0x582   :  { %v3099_v24 = vsel %vm6639_vm4, %v6115_v48, 0.0  ;;  %vm6644_vm4 = vnez %v6531_v4 }
 0x583   :  { %v3102_v6 = vsel %vm6644_vm4, %v6138_v44, 0.0 }
 0x584   :  { %4649 = vmatmul.mubr.msk.f32.gmra.mrb[48].mxu0 %vm6635_vm3, %v6017_v34  ;;  %vm6640_vm3 = vmmov %vm6633_vm0 }
 0x585   :  { %4651 = vmatprep.mubr.msk.f32.mxu0 %vm6636_vm8, %v6026_v47  ;;  %vm6641_vm8 = vnez %v6525_v10  ;;  %v6325_v10 = vadd.f32 %v5939_v58, %v5984_v35 }
 0x586   :  { %v3100_v3 = vsel %vm6641_vm8, %v6121_v17, 0.0  ;;  %v3505_v60 = vsel %vm6641_vm8, %v6133_v41, 0.0  ;;  %vm6674_vm8 = vmmov %vm6633_vm0 }
 0x588   :  { %4652 = vmatmul.mubr.msk.f32.gmra.mrb[50].mxu0 %vm6637_vm2, %v6108_v54  ;;  %vm6642_vm2 = vmmov %vm6633_vm0 }
 0x589   :  { %4658 = vmatprep.mubr.msk.f32.mxu0 %vm6638_vm10, %v3097_v5  ;;  %vm6643_vm10 = vnez %v6528_v39 }
 0x58a   :  { %v3101_v61 = vsel %vm6643_vm10, %v6133_v41, 0.0  ;;  %vm6648_vm10 = vmmov %vm6633_vm0 }
 0x58c   :  { %4659 = vmatmul.mubr.msk.f32.vlgmr.msra.gmra.mrb[44].mxu0 %vm6633_vm0, %v3098_v33 }
 0x58d   :  { %4835 = vmatpush3.bf16.msra.mxu0 %v6632_v15  ;;  %4661 = vmatprep.mubr.msk.f32.mxu0 %vm6640_vm3, %v3099_v24  ;;  %v3103_v15 = vsel %vm6614_vm1, %v6148_v50, 0.0  ;;  %vm6646_vm3 = vcmask 1046528   ;;  %v3244_v24 = vsel %vm6619_vm15, %v6038_v38, 0.0  ;;  %vm6651_vm15 = vmmov %vm6633_vm0 }
 0x58e   :  { %4837 = vmatprep.subr.bf16.mxu0 %v5604_v32  ;;  %v3095_v5 = vsel %vm6646_vm3, %v2677_v22, %v5378_v46  ;;  %v3246_v46 = vsel %vm5299_vm6, %v6055_v31, 0.0  ;;  %vm6654_vm6 = vmmov %vm6633_vm0  ;;  %vm6655_vm3 = vnez %v6513_v18 }
 0x58f   :  { %v3104_v33 = vsel %vm6617_vm14, %v3095_v5, 0.0  ;;  %vm6650_vm14 = vmmov %vm6633_vm0  ;;  %v3250_v28 = vsel %vm6655_vm3, %v2833_v59, 0.0  ;;  %vm6666_vm3 = vnez %v6519_v13  ;;  %v3507_v13 = vsel %vm6644_vm4, %v6148_v50, 0.0 }
 0x590   :  { %4662 = vmatmul.mubr.msk.f32.gmra.mrb[46].mxu0 %vm6642_vm2, %v3100_v3  ;;  %vm6647_vm2 = vmmov %vm6633_vm0  ;;  %v3245_v3 = vsel %vm5289_vm5, %v6049_v25, 0.0  ;;  %vm6652_vm5 = vnez %v6509_v27  ;;  %v3503_v52 = vsel %vm6666_vm3, %v6115_v48, 0.0 }
 0x591   :  { %4664 = vmatprep.mubr.msk.f32.mxu0 %vm6633_vm0, %v3101_v61  ;;  %v3248_v62 = vsel %vm6652_vm5, %v6072_v36, 0.0  ;;  %vm6662_vm5 = vmmov %vm6633_vm0 }
 0x594   :  { %4665 = vmatmul.mubr.msk.f32.gmra.mrb[48].mxu0 %vm6645_vm11, %v3102_v6  ;;  %vm6649_vm11 = vmmov %vm6633_vm0 }
 0x595   :  { %4667 = vmatprep.mubr.msk.f32.mxu0 %vm6647_vm2, %v3103_v15  ;;  %vm6656_vm2 = vcmask 1040384  }
 0x596   :  { %v3242_v21 = vsel %vm6656_vm2, %v2832_v19, %v5251_v43  ;;  %v3502_v43 = vsel %vm5401_vm13, %v6103_v20, 0.0  ;;  %vm6667_vm2 = vmmov %vm6633_vm0  ;;  %vm6670_vm13 = vnez %v6528_v39  ;;  %v2181_v39 = vmul.f32 %v6325_v10, %v6325_v10 }
 0x597   :  { %v3251_v27 = vsel %vm5388_vm12, %v3242_v21, 0.0  ;;  %vm6663_vm12 = vmmov %vm6633_vm0  ;;  %v3506_v12 = vsel %vm6670_vm13, %v6138_v44, 0.0 }
 0x598   :  { %4668 = vmatmul.mubr.msk.f32.gmra.mrb[50].mxu0 %vm6648_vm10, %v3104_v33  ;;  %vm6653_vm10 = vmmov %vm6633_vm0  ;;  %v2190_v14 = vmul.f32 %v2181_v39, %v6325_v10 }
 0x599   :  { %4674 = vmatprep.mubr.msk.f32.mxu0 %vm6633_vm0, %v3244_v24  ;;  %vm6685_vm13 = vmmov %vm6633_vm0 }
 0x59a   :  { %v2199_v8 = vmul.f32 0.044715, %v2190_v14 }
 0x59c   :  { %4675 = vmatmul.mubr.msk.f32.vlgmr.msra.gmra.mrb[44].mxu0 %vm6649_vm11, %v3245_v3  ;;  %vm6658_vm11 = vmmov %vm6633_vm0 }
 0x59d   :  { %4839 = vmatpush3.bf16.msra.mxu0 %v5604_v32  ;;  %4677 = vmatprep.mubr.msk.f32.mxu0 %vm6650_vm14, %v3246_v46  ;;  %vm6660_vm14 = vmmov %vm6633_vm0 }
 0x59e   :  { %4841 = vmatprep.subr.bf16.mxu0 %v5649_v53 }
 0x5a0   :  { %4678 = vmatmul.mubr.msk.f32.gmra.mrb[46].mxu0 %vm6651_vm15, %v3247_v49  ;;  %vm6661_vm15 = vmmov %vm6633_vm0 }
 0x5a1   :  { %4680 = vmatprep.mubr.msk.f32.mxu0 %vm6653_vm10, %v3248_v62  ;;  %vm6664_vm10 = vmmov %vm6633_vm0 }
 0x5a4   :  { %4681 = vmatmul.mubr.msk.f32.gmra.mrb[48].mxu0 %vm6654_vm6, %v3249_v2  ;;  %vm6665_vm6 = vmmov %vm6633_vm0 }
 0x5a5   :  { %4683 = vmatprep.mubr.msk.f32.mxu0 %vm6657_vm7, %v3250_v28  ;;  %vm6668_vm7 = vnez %v6521_v55  ;;  %v3508_v55 = vsel %vm6614_vm1, %v3095_v5, 0.0  ;;  %vm6675_vm1 = vcmp.lt.s32.totalorder %v5748_v37, 8 }
 0x5a6   :  { %v3504_v18 = vsel %vm6668_vm7, %v6121_v17, 0.0  ;;  %vm6676_vm4 = vmmov %vm6675_vm1 }
 0x5a7   :  { %v3660_v20 = vsel %vm6676_vm4, %v5995_v1, 0.0  ;;  %vm6681_vm3 = vmmov %vm6675_vm1 }
 0x5a8   :  { %4684 = vmatmul.mubr.msk.f32.gmra.mrb[50].mxu0 %vm6633_vm0, %v3251_v27  ;;  %v3662_v33 = vsel %vm6681_vm3, %v6007_v26, 0.0  ;;  %vm6683_vm7 = vmmov %vm6675_vm1 }
 0x5a9   :  { %4690 = vmatprep.mubr.msk.f32.mxu0 %vm6658_vm11, %v5995_v1  ;;  %vm6669_vm11 = vmmov %vm6633_vm0  ;;  %v3663_v46 = vsel %vm6683_vm7, %v6015_v63, 0.0 }
 0x5aa   :  { %vm6691_vm4 = vmmov %vm6633_vm0 }
 0x5ac   :  { %4691 = vmatmul.mubr.msk.f32.vlgmr.msra.gmra.mrb[44].mxu0 %vm6659_vm9, %v6005_v7  ;;  %vm6671_vm9 = vmmov %vm6633_vm0 }
 0x5ad   :  { %4843 = vmatpush3.bf16.msra.mxu0 %v5649_v53  ;;  %4693 = vmatprep.mubr.msk.f32.mxu0 %vm6660_vm14, %v6007_v26  ;;  %vm6672_vm14 = vmmov %vm6633_vm0 }
 0x5b0   :  { %4694 = vmatmul.mubr.msk.f32.gmra.mrb[46].mxu0 %vm6661_vm15, %v6015_v63  ;;  %vm6673_vm15 = vmmov %vm6633_vm0 }
 0x5b1   :  { %4696 = vmatprep.mubr.msk.f32.mxu0 %vm6662_vm5, %v6017_v34  ;;  %vm6677_vm5 = vmmov %vm6633_vm0 }
 0x5b4   :  { %4697 = vmatmul.mubr.msk.f32.gmra.mrb[48].mxu0 %vm6663_vm12, %v6026_v47  ;;  %vm6678_vm12 = vmmov %vm6675_vm1 }
 0x5b5   :  { %4699 = vmatprep.mubr.msk.f32.mxu0 %vm6664_vm10, %v6108_v54  ;;  %v3661_v19 = vsel %vm6678_vm12, %v6005_v7, 0.0  ;;  %vm6679_vm10 = vmmov 0  }
 0x5b8   :  { %4700 = vmatmul.mubr.f32.gmra.mrb[50].mxu0 %v6547_v40 }
 0x5b9   :  { %4706 = vmatprep.mubr.msk.f32.mxu0 %vm6665_vm6, %v3502_v43  ;;  %vm6680_vm6 = vmmov %vm6633_vm0 }
 0x5bc   :  { %4707 = vmatmul.mubr.msk.f32.vlgmr.msra.gmra.mrb[44].mxu0 %vm6667_vm2, %v3503_v52  ;;  %vm6682_vm2 = vmmov %vm6633_vm0 }
 0x5bd   :  { %4709 = vmatprep.mubr.msk.f32.mxu0 %vm6633_vm0, %v3504_v18 }
 0x5c0   :  { %4710 = vmatmul.mubr.msk.f32.gmra.mrb[46].mxu0 %vm6669_vm11, %v3505_v60  ;;  %vm6684_vm11 = vmmov %vm6675_vm1 }
 0x5c1   :  { %4712 = vmatprep.mubr.msk.f32.mxu0 %vm6671_vm9, %v3506_v12  ;;  %vm6686_vm9 = vmmov %vm6675_vm1 }
 0x5c4   :  { %4713 = vmatmul.mubr.msk.f32.gmra.mrb[48].mxu0 %vm6672_vm14, %v3507_v13  ;;  %vm6687_vm14 = vmmov %vm6633_vm0 }
 0x5c5   :  { %4715 = vmatprep.mubr.msk.f32.mxu0 %vm6673_vm15, %v3508_v55  ;;  %vm6688_vm15 = vmmov %vm6675_vm1  ;;  %v6692_v55 = vld [vmem:[#allocation7_spill] sm:$0xff] }
 0x5c8   :  { %4716 = vmatmul.mubr.msk.f32.gmra.mrb[50].mxu0 %vm6674_vm8, %v5730_v56  ;;  %v3659_v56 = vsel %vm6675_vm1, %v5993_v0, 0.0  ;;  %v2208_v0 = vadd.f32 %v2199_v8, %v6325_v10  ;;  %vm6689_vm8 = vmmov %vm6633_vm0 }
 0x5c9   :  { %vm6690_vm1 = vmmov %vm6633_vm0 }
 0x5ca   :  { %v2217_v5 = vmul.f32 0.7978846, %v2208_v0 }
 0x5cc   :  { %5012 = vtanh.f32 %v2217_v5 }
 0x5d6   :  { %v5013_v18 = vpop.eup %5012 }
 0x5d7   :  { %v2235_v12 = vadd.f32 1.0, %v5013_v18 }
 0x68f   :  { %v4708_v32 = vpop.f32.mrb[44].mxu0 }
 0x690   :  { %v3644_v4 = vadd.f32 %v4708_v32, %v5753_v45  ;;  %v3596_v53 = vpop.f32.mrb[45].mxu0 }
 0x691   :  { %v3643_v38 = vadd.f32 %v5753_v45, %v3596_v53 }
 0x692   :  { %v3652_v25 = vmax.f32 %v3644_v4, 0.0 }
 0x693   :  { %v3651_v31 = vmax.f32 %v3643_v38, 0.0  ;;  %v4711_v16 = vpop.f32.mrb[46].mxu0 }
 0x694   :  { %v3606_v58 = vpop.f32.mrb[47].mxu0  ;;  %v3668_v48 = vadd.f32 %v3660_v20, %v3652_v25  ;;  %v3646_v41 = vadd.f32 %v4711_v16, %v5753_v45 }
 0x695   :  { %v3667_v35 = vadd.f32 %v3659_v56, %v3651_v31  ;;  %v3645_v36 = vadd.f32 %v5753_v45, %v3606_v58 }
 0x696   :  { %v3676_v1 = vadd.f32 %v3668_v48, %v5953_v11  ;;  %v3654_v59 = vmax.f32 %v3646_v41, 0.0 }
 0x697   :  { %v3675_v17 = vadd.f32 %v3667_v35, %v5948_v29  ;;  %v3653_v22 = vmax.f32 %v3645_v36, 0.0  ;;  %v4714_v44 = vpop.f32.mrb[48].mxu0 }
 0x698   :  { %v3616_v50 = vpop.f32.mrb[49].mxu0  ;;  %v3670_v7 = vadd.f32 %v3662_v33, %v3654_v59  ;;  %v3648_v11 = vadd.f32 %v4714_v44, %v5753_v45 }
 0x699   :  { %4723 = vmatmul.mubr.msk.f32.vlgmr.msra.gmra.mrb[34].mxu1 %vm6677_vm5, %v3675_v17  ;;  %v3669_v29 = vadd.f32 %v3661_v19, %v3653_v22  ;;  %v3647_v61 = vadd.f32 %v5753_v45, %v3616_v50  ;;  %vm6693_vm5 = vcmask 261120  }
 0x69a   :  { %4725 = vmatprep.mubr.msk.f32.mxu1 %vm6679_vm10, %v6547_v40  ;;  %v3678_v26 = vadd.f32 %v3670_v7, %v5963_v30  ;;  %v3656_v49 = vmax.f32 %v3648_v11, 0.0  ;;  %v3665_v30 = vsel %vm6686_vm9, %v6026_v47, 0.0  ;;  %vm6694_vm12 = vmmov %vm6693_vm5 }
 0x69b   :  { %v4717_v6 = vpop.f32.mrb[50].mxu0  ;;  %v3677_v24 = vadd.f32 %v3669_v29, %v5958_v42  ;;  %v3655_v3 = vmax.f32 %v3647_v61, 0.0  ;;  %v3664_v42 = vsel %vm6684_vm11, %v6017_v34, 0.0  ;;  %vm6697_vm3 = vmmov %vm6693_vm5 }
 0x69c   :  { %v3626_v15 = vpop.f32.mrb[51].mxu0  ;;  %v3672_v28 = vadd.f32 %v3664_v42, %v3656_v49  ;;  %v3650_v21 = vadd.f32 %v4717_v6, %v5753_v45 }
 0x69d   :  { %4726 = vmatmul.mubr.msk.f32.gmra.mrb[36].mxu1 %vm6680_vm6, %v3676_v1  ;;  %v3671_v62 = vadd.f32 %v3663_v46, %v3655_v3  ;;  %v3649_v2 = vadd.f32 %v5753_v45, %v3626_v15  ;;  %v3666_v45 = vsel %vm6688_vm15, %v6108_v54, 0.0  ;;  %vm6696_vm6 = vmmov %vm6693_vm5 }
 0x69e   :  { %4728 = vmatprep.mubr.msk.f32.mxu1 %vm6679_vm10, %v6547_v40  ;;  %v3680_v34 = vadd.f32 %v3672_v28, %v5971_v23  ;;  %v3658_v43 = vmax.f32 %v3650_v21, 0.0 }
 0x69f   :  { %v3679_v63 = vadd.f32 %v3671_v62, %v5967_v57  ;;  %v3657_v27 = vmax.f32 %v3649_v2, 0.0  ;;  %v2172_v57 = vmul.f32 0.5, %v6325_v10 }
 0x6a0   :  { %v3674_v47 = vadd.f32 %v3666_v45, %v3658_v43 }
 0x6a1   :  { %4729 = vmatmul.mubr.msk.f32.gmra.mrb[38].mxu1 %vm6682_vm2, %v3677_v24  ;;  %v3673_v52 = vadd.f32 %v3665_v30, %v3657_v27  ;;  %v2244_v13 = vmul.f32 %v2235_v12, %v2172_v57  ;;  %vm6698_vm2 = vmmov %vm6697_vm3 }
 0x6a2   :  { %4731 = vmatprep.mubr.msk.f32.mxu1 %vm6679_vm10, %v6547_v40  ;;  %v3682_v23 = vadd.f32 %v3674_v47, %v5979_v51  ;;  %vm6699_vm7 = vmmov %vm6698_vm2 }
 0x6a3   :  { %v3681_v60 = vadd.f32 %v3673_v52, %v5975_v9  ;;  %v3683_v37 = vadd.f32 %v2244_v13, %v2244_v13 }
 0x6a5   :  { %4732 = vmatmul.mubr.msk.f32.gmra.mrb[40].mxu1 %vm6633_vm0, %v3678_v26  ;;  %vm6700_vm0 = vmmov %vm6698_vm2 }
 0x6a6   :  { %4734 = vmatprep.mubr.msk.f32.mxu1 %vm6679_vm10, %v6547_v40  ;;  %vm6701_vm11 = vmmov %vm6700_vm0 }
 0x6a9   :  { %4735 = vmatmul.mubr.msk.f32.gmra.mrb[42].mxu1 %vm6685_vm13, %v3679_v63 }
 0x6aa   :  { %4737 = vmatprep.mubr.msk.f32.mxu1 %vm6679_vm10, %v6547_v40 }
 0x6ad   :  { %4738 = vmatmul.mubr.msk.f32.gmra.mrb[44].mxu1 %vm6687_vm14, %v3680_v34 }
 0x6ae   :  { %4740 = vmatprep.mubr.msk.f32.mxu1 %vm6679_vm10, %v6547_v40 }
 0x6b1   :  { %4741 = vmatmul.mubr.msk.f32.gmra.mrb[46].mxu1 %vm6689_vm8, %v3681_v60 }
 0x6b2   :  { %4743 = vmatprep.mubr.msk.f32.mxu1 %vm6679_vm10, %v6547_v40 }
 0x6b5   :  { %4744 = vmatmul.mubr.msk.f32.gmra.mrb[48].mxu1 %vm6690_vm1, %v3682_v23 }
 0x6b6   :  { %4746 = vmatprep.mubr.msk.f32.mxu1 %vm6679_vm10, %v6547_v40  ;;  %vm6695_vm10 = vmmov %vm6693_vm5 }
 0x6b9   :  { %4747 = vmatmul.mubr.msk.f32.gmra.mrb[50].mxu1 %vm6691_vm4, %v3683_v37 }
 0x76c   :  { %v3777_v54 = vpop.f32.mrb[34].mxu1 }
 0x76d   :  { %v3778_v9 = vadd.f32 %v6692_v55, %v3777_v54  ;;  %v4724_v10 = vpop.f32.mrb[35].mxu1 }
 0x76f   :  { %4040 = vst.msk [vmem:[%s6445_s3 + $0x48] sm:$0xff] %vm6693_vm5, %v3778_v9 }
 0x770   :  { %v3782_v39 = vpop.f32.mrb[36].mxu1 }
 0x771   :  { %v3783_v51 = vadd.f32 %v6692_v55, %v3782_v39  ;;  %v4727_v32 = vpop.f32.mrb[37].mxu1 }
 0x773   :  { %4041 = vst.msk [vmem:[%s6445_s3 + $0x50] sm:$0xff] %vm6694_vm12, %v3783_v51 }
 0x774   :  { %v3787_v40 = vpop.f32.mrb[38].mxu1 }
 0x775   :  { %v3788_v4 = vadd.f32 %v6692_v55, %v3787_v40  ;;  %v4730_v53 = vpop.f32.mrb[39].mxu1 }
 0x777   :  { %4042 = vst.msk [vmem:[%s6445_s3 + $0x58] sm:$0xff] %vm6695_vm10, %v3788_v4 }
 0x778   :  { %v3792_v38 = vpop.f32.mrb[40].mxu1 }
 0x779   :  { %v3793_v14 = vadd.f32 %v6692_v55, %v3792_v38  ;;  %v4733_v25 = vpop.f32.mrb[41].mxu1 }
 0x77b   :  { %4043 = vst.msk [vmem:[%s6445_s3 + $0x60] sm:$0xff] %vm6696_vm6, %v3793_v14 }
 0x77c   :  { %v3797_v31 = vpop.f32.mrb[42].mxu1 }
 0x77d   :  { %v3798_v16 = vadd.f32 %v6692_v55, %v3797_v31  ;;  %v4736_v56 = vpop.f32.mrb[43].mxu1 }
 0x77f   :  { %4044 = vst.msk [vmem:[%s6445_s3 + $0x68] sm:$0xff] %vm6697_vm3, %v3798_v16 }
 0x780   :  { %v3802_v58 = vpop.f32.mrb[44].mxu1 }
 0x781   :  { %v3803_v35 = vadd.f32 %v6692_v55, %v3802_v58  ;;  %v4739_v36 = vpop.f32.mrb[45].mxu1 }
 0x783   :  { %4045 = vst.msk [vmem:[%s6445_s3 + $0x70] sm:$0xff] %vm6698_vm2, %v3803_v35 }
 0x784   :  { %v3807_v8 = vpop.f32.mrb[46].mxu1 }
 0x785   :  { %v3808_v20 = vadd.f32 %v6692_v55, %v3807_v8  ;;  %v4742_v48 = vpop.f32.mrb[47].mxu1 }
 0x787   :  { %4046 = vst.msk [vmem:[%s6445_s3 + $0x78] sm:$0xff] %vm6699_vm7, %v3808_v20 }
 0x788   :  { %v3812_v17 = vpop.f32.mrb[48].mxu1 }
 0x789   :  { %v3813_v41 = vadd.f32 %v6692_v55, %v3812_v17  ;;  %v4745_v22 = vpop.f32.mrb[49].mxu1 }
 0x78b   :  { %4047 = vst.msk [vmem:[%s6445_s3 + $0x80] sm:$0xff] %vm6700_vm0, %v3813_v41 }
 0x78c   :  { %v3817_v44 = vpop.f32.mrb[50].mxu1 }
 0x78d   :  { %v3818_v50 = vadd.f32 %v6692_v55, %v3817_v44  ;;  %v4748_v0 = vpop.f32.mrb[51].mxu1 }
 0x78f   :  { %4048 = vst.msk [vmem:[%s6445_s3 + $0x88] sm:$0xff] %vm6701_vm11, %v3818_v50 }

</bundles_post_ra>
